<compile_context>
chip_gen: v5e
topology: v5e:2x2
jax: 0.10.0
libtpu: 0.0.40
codegen_flags: <defaults>
</compile_context>

<pallas_src>
import functools

import jax
import jax.numpy as jnp
from jax import lax
from jax.experimental import pallas as pl
from jax.experimental.pallas import tpu as pltpu

_MXU_DTYPE = jnp.bfloat16   # operand dtype for MXU matmuls; accumulation is f32
_SUBLANE = 8                # sublane width -> batch padding
_LANE = 128                 # lane width   -> fc output padding


# ------------------------------ Pallas kernel -------------------------------


def _qst_encoder_kernel(emb_ref, wih0_ref, wihr_ref, whh_ref, b_ref,
                        fcw_ref, fcb_ref, out_ref, gx_ref, ybuf,
                        *, num_layers, seq_len, batch_padded):
    """Fully fused QstEncoder forward.

    emb_ref : (T*Bp, E)  f32   time-major embedding rows (pre-tanh)
    wih0_ref: (E, 4H)    bf16  layer-0 input weights
    wihr_ref: (max(L-1,1), H, 4H) bf16  input weights of layers >= 1
    whh_ref : (L, H, 4H) bf16  recurrent weights
    b_ref   : (L, 1, 4H) f32   combined gate bias (b_ih + b_hh)
    fcw_ref : (2*L*H, Ep) bf16 final Linear weight (transposed, lane-padded)
    fcb_ref : (1, Ep)    f32   final Linear bias (lane-padded)
    out_ref : (Bp, Ep)   f32
    gx_ref  : VMEM (T*Bp, 4H) f32   gate pre-activations of the current layer
    ybuf    : VMEM (T*Bp, H)  bf16  current layer's outputs (next layer's input)
    """
    T, Bp, L = seq_len, batch_padded, num_layers
    H = whh_ref.shape[-1] // 4
    H3 = 3 * H

    # Fused tanh(word2vec) on the embedding rows; bf16 copy feeds the MXU.
    x0 = jnp.tanh(emb_ref[...]).astype(_MXU_DTYPE)            # (T*Bp, E)

    feats = []   # [tanh(h_0), tanh(c_0), tanh(h_1), tanh(c_1), ...]

    for layer in range(L):
        # Hoisted input projection: one big MXU matmul over all T*Bp rows.
        if layer == 0:
            gx = jnp.dot(x0, wih0_ref[...], preferred_element_type=jnp.float32)
        else:
            gx = jnp.dot(ybuf[...], wihr_ref[layer - 1],
                         preferred_element_type=jnp.float32)
        # Park gate pre-activations in VMEM; the recurrence indexes the ref
        # per step (bounds live ranges instead of one huge SSA value).
        # TODO(synk): at production (T,B,H), keep this bf16 or time-chunked.
        gx_ref[...] = gx + b_ref[layer]

        w_hh = whh_ref[layer]                                  # (H, 4H) bf16
        last_layer = (layer + 1 == L)

        def step(t, carry):
            h, c = carry                                       # f32 (Bp, H)
            row = pl.multiple_of(t * Bp, Bp)                   # sublane-aligned
            gates = gx_ref[pl.ds(row, Bp), :] + jnp.dot(
                h.astype(_MXU_DTYPE), w_hh,
                preferred_element_type=jnp.float32)            # (Bp, 4H) f32
            # Gate order (i, f, o, g): sigmoid (via EUP tanh) on [0:3H],
            # plain tanh only on the g columns.
            sig = 0.5 * jnp.tanh(0.5 * gates[:, :H3]) + 0.5
            g_g = jnp.tanh(gates[:, H3:])
            c_new = sig[:, H:2 * H] * c + sig[:, 0:H] * g_g
            h_new = sig[:, 2 * H:H3] * jnp.tanh(c_new)
            if not last_layer:
                # Stash this layer's output (bf16) for the next layer's big
                # input-projection matmul — never touches HBM.
                ybuf[pl.ds(row, Bp), :] = h_new.astype(_MXU_DTYPE)
            return h_new, c_new

        h0 = jnp.zeros((Bp, H), jnp.float32)
        c0 = jnp.zeros((Bp, H), jnp.float32)
        # T is small here -> full unroll gives the LLO scheduler visibility.
        # TODO(synk): for large T use unroll=<small int> instead of True.
        h, c = lax.fori_loop(0, T, step, (h0, c0), unroll=True)

        feats.append(jnp.tanh(h))
        feats.append(jnp.tanh(c))

    # torch: cat((hidden, cell), 2).transpose(0,1).reshape(B,-1) -> per-row
    # [h_0, c_0, h_1, c_1, ...]; tanh; Linear.  Single merged FC matmul.
    feat = jnp.concatenate(feats, axis=-1).astype(_MXU_DTYPE)  # (Bp, 2LH)
    out_ref[...] = (jnp.dot(feat, fcw_ref[...],
                            preferred_element_type=jnp.float32)
                    + fcb_ref[...]).astype(out_ref.dtype)


# --------------------------- model (glue + kernel) --------------------------


def init_params(key, qst_vocab_size, word_embed_size, embed_size,
                num_layers, hidden_size):
    H = hidden_size
    e_pad = ((embed_size + _LANE - 1) // _LANE) * _LANE
    keys = jax.random.split(key, 3 + 3 * num_layers)
    embedding = 0.1 * jax.random.normal(
        keys[0], (qst_vocab_size, word_embed_size), jnp.float32)

    w_ih, w_hh, b = [], [], []
    for l in range(num_layers):
        in_dim = word_embed_size if l == 0 else H
        # Gate column order (i, f, o, g); combined bias b_ih + b_hh.
        w_ih.append(0.1 * jax.random.normal(
            keys[1 + 3 * l], (in_dim, 4 * H), jnp.float32))
        w_hh.append(0.1 * jax.random.normal(
            keys[2 + 3 * l], (H, 4 * H), jnp.float32))
        b.append(0.1 * jax.random.normal(
            keys[3 + 3 * l], (1, 4 * H), jnp.float32))

    fc_w = 0.1 * jax.random.normal(
        keys[-2], (2 * num_layers * H, embed_size), jnp.float32)
    fc_b = 0.1 * jax.random.normal(keys[-1], (1, embed_size), jnp.float32)
    # Pad the FC output dim to a lane-dense 128 multiple (sliced after call).
    fc_w = jnp.pad(fc_w, ((0, 0), (0, e_pad - embed_size)))
    fc_b = jnp.pad(fc_b, ((0, 0), (0, e_pad - embed_size)))

    return {
        "embedding": embedding,                                        # f32
        "w_ih0": w_ih[0].astype(_MXU_DTYPE),                           # (E, 4H)
        "w_ih_rest": (jnp.stack(w_ih[1:], 0) if num_layers > 1
                      else jnp.zeros((1, H, 4 * H))).astype(_MXU_DTYPE),
        "w_hh": jnp.stack(w_hh, 0).astype(_MXU_DTYPE),                 # (L,H,4H)
        "b": jnp.stack(b, 0),                                          # (L,1,4H) f32
        "fc_w": fc_w.astype(_MXU_DTYPE),                               # (2LH, Ep)
        "fc_b": fc_b,                                                  # (1, Ep) f32
    }


@functools.partial(jax.jit, static_argnames=("num_layers", "embed_size"))
def qst_encoder_forward(question, params, num_layers, embed_size):
    # question: (B, T) int32 token ids
    B, T = question.shape
    H = params["w_hh"].shape[-1] // 4
    e_pad = params["fc_w"].shape[-1]

    # Pad the batch to the 8-sublane width so every per-step tile is aligned.
    Bp = ((B + _SUBLANE - 1) // _SUBLANE) * _SUBLANE
    if Bp != B:
        question = jnp.pad(question, ((0, Bp - B), (0, 0)))

    # TODO(synk): the embedding lookup is a data-dependent gather; it stays in
    # XLA glue (jnp.take) rather than an in-kernel DMA gather at this size.
    emb = jnp.take(params["embedding"], question, axis=0)      # (Bp, T, E)
    x = jnp.transpose(emb, (1, 0, 2)).reshape(T * Bp, -1)      # time-major rows

    kernel = functools.partial(
        _qst_encoder_kernel, num_layers=num_layers, seq_len=T, batch_padded=Bp)

    out = pl.pallas_call(
        kernel,
        out_shape=jax.ShapeDtypeStruct((Bp, e_pad), jnp.float32),
        scratch_shapes=[
            pltpu.VMEM((T * Bp, 4 * H), jnp.float32),   # gate pre-activations
            pltpu.VMEM((T * Bp, H), _MXU_DTYPE),        # inter-layer outputs
        ],
        compiler_params=pltpu.CompilerParams(
            vmem_limit_bytes=48 * 1024 * 1024),
    )(x, params["w_ih0"], params["w_ih_rest"], params["w_hh"],
      params["b"], params["fc_w"], params["fc_b"])

    return out[:B, :embed_size]


def qst_encoder_reference(question, params, num_layers, embed_size):
    """Pure-JAX f32 reference (same weights, upcast) for a tolerance check."""
    B, T = question.shape
    H = params["w_hh"].shape[-1] // 4
    emb = jnp.take(params["embedding"], question, axis=0)      # (B, T, E)
    x = jnp.tanh(jnp.transpose(emb, (1, 0, 2)))                # (T, B, E)
    feats = []
    for l in range(num_layers):
        w_ih = (params["w_ih0"] if l == 0
                else params["w_ih_rest"][l - 1]).astype(jnp.float32)
        w_hh = params["w_hh"][l].astype(jnp.float32)
        bias = params["b"][l]
        h = jnp.zeros((B, H), jnp.float32)
        c = jnp.zeros((B, H), jnp.float32)
        ys = []
        for t in range(T):
            g = x[t] @ w_ih + h @ w_hh + bias                  # gate order (i,f,o,g)
            i_g = jax.nn.sigmoid(g[:, 0:H])
            f_g = jax.nn.sigmoid(g[:, H:2 * H])
            o_g = jax.nn.sigmoid(g[:, 2 * H:3 * H])
            g_g = jnp.tanh(g[:, 3 * H:])
            c = f_g * c + i_g * g_g
            h = o_g * jnp.tanh(c)
            ys.append(h)
        x = jnp.stack(ys, axis=0)
        feats += [jnp.tanh(h), jnp.tanh(c)]
    feat = jnp.concatenate(feats, axis=-1)
    out = feat @ params["fc_w"].astype(jnp.float32) + params["fc_b"]
    return out[:, :embed_size]


if __name__ == "__main__":
    qst_vocab_size = 50
    word_embed_size = 32
    embed_size = 32
    num_layers = 2
    hidden_size = 32
    batch = 2
    seq_len = 8

    key = jax.random.PRNGKey(0)
    pkey, qkey = jax.random.split(key)
    params = init_params(pkey, qst_vocab_size, word_embed_size, embed_size,
                         num_layers, hidden_size)
    question = jax.random.randint(
        qkey, (batch, seq_len), 0, qst_vocab_size, dtype=jnp.int32)

    out = qst_encoder_forward(question, params, num_layers, embed_size)
    out = jax.block_until_ready(out)

    assert out.shape == (batch, embed_size), out.shape
    assert bool(jnp.all(jnp.isfinite(out)))

    ref = qst_encoder_reference(question, params, num_layers, embed_size)
    assert bool(jnp.allclose(out, ref, atol=2e-2, rtol=2e-2)), (
        float(jnp.max(jnp.abs(out - ref))))
    print("KERNEL_OK")
</pallas_src>

<mosaic_0001>
module attributes {stable_mosaic.version = 11 : i64} {
  func.func @_qst_encoder_kernel(%arg0: memref<64x32xf32, #tpu.memory_space<vmem>>, %arg1: memref<32x128xbf16, #tpu.memory_space<vmem>>, %arg2: memref<1x32x128xbf16, #tpu.memory_space<vmem>>, %arg3: memref<2x32x128xbf16, #tpu.memory_space<vmem>>, %arg4: memref<2x1x128xf32, #tpu.memory_space<vmem>>, %arg5: memref<128x128xbf16, #tpu.memory_space<vmem>>, %arg6: memref<1x128xf32, #tpu.memory_space<vmem>>, %arg7: memref<8x128xf32, #tpu.memory_space<vmem>>, %arg8: memref<64x128xf32, #tpu.memory_space<vmem>>, %arg9: memref<64x32xbf16, #tpu.memory_space<vmem>>) attributes {dimension_semantics = [], scalar_prefetch = 0 : i64, scratch_operands = 2 : i64, tpu.core_type = #tpu.core_type<tc>} {
    %c0 = arith.constant 0 : index
    %c0_0 = arith.constant 0 : index
    %0 = vector.load %arg0[%c0, %c0_0] : memref<64x32xf32, #tpu.memory_space<vmem>>, vector<64x32xf32>
    %1 = math.tanh %0 : vector<64x32xf32>
    %2 = arith.truncf %1 : vector<64x32xf32> to vector<64x32xbf16>
    %c0_1 = arith.constant 0 : index
    %c0_2 = arith.constant 0 : index
    %3 = vector.load %arg1[%c0_1, %c0_2] : memref<32x128xbf16, #tpu.memory_space<vmem>>, vector<32x128xbf16>
    %cst = arith.constant dense<0.000000e+00> : vector<64x128xf32>
    %4 = tpu.matmul %2, %3, %cst {dimension_numbers = #tpu.dot_dimension_numbers<[1], [0], [0], [1], [0, 0, 1, 1], [], []>} : vector<64x32xbf16>, vector<32x128xbf16>, vector<64x128xf32> -> vector<64x128xf32>
    %c0_3 = arith.constant 0 : index
    %c0_4 = arith.constant 0 : index
    %c0_5 = arith.constant 0 : index
    %5 = vector.load %arg4[%c0_3, %c0_4, %c0_5] : memref<2x1x128xf32, #tpu.memory_space<vmem>>, vector<1x1x128xf32>
    %6 = vector.shape_cast %5 : vector<1x1x128xf32> to vector<1x128xf32>
    %7 = vector.broadcast %6 : vector<1x128xf32> to vector<64x128xf32>
    %8 = arith.addf %4, %7 : vector<64x128xf32>
    %c0_6 = arith.constant 0 : index
    %c0_7 = arith.constant 0 : index
    %9 = vector.load %arg8[%c0_6, %c0_7] : memref<64x128xf32, #tpu.memory_space<vmem>>, vector<64x128xf32>
    tpu.vector_store %arg8[%c0_6, %c0_7], %8 {strides = array<i32>} : memref<64x128xf32, #tpu.memory_space<vmem>>, vector<64x128xf32>,
    %c0_8 = arith.constant 0 : index
    %c0_9 = arith.constant 0 : index
    %c0_10 = arith.constant 0 : index
    %10 = vector.load %arg3[%c0_8, %c0_9, %c0_10] : memref<2x32x128xbf16, #tpu.memory_space<vmem>>, vector<1x32x128xbf16>
    %11 = vector.shape_cast %10 : vector<1x32x128xbf16> to vector<32x128xbf16>
    %cst_11 = arith.constant 0.000000e+00 : f32
    %12 = vector.broadcast %cst_11 : f32 to vector<8x32xf32>
    %cst_12 = arith.constant 0.000000e+00 : f32
    %13 = vector.broadcast %cst_12 : f32 to vector<8x32xf32>
    %c0_i32 = arith.constant 0 : i32
    %c8_i32 = arith.constant 8 : i32
    %14 = arith.muli %c0_i32, %c8_i32 : i32
    %15 = tpu.assume_multiple %14, 8 : i32
    %16 = arith.index_cast %15 : i32 to index
    %c0_13 = arith.constant 0 : index
    %17 = vector.load %arg8[%16, %c0_13] : memref<64x128xf32, #tpu.memory_space<vmem>>, vector<8x128xf32>
    %18 = arith.truncf %12 : vector<8x32xf32> to vector<8x32xbf16>
    %cst_14 = arith.constant dense<0.000000e+00> : vector<8x128xf32>
    %19 = tpu.matmul %18, %11, %cst_14 {dimension_numbers = #tpu.dot_dimension_numbers<[1], [0], [0], [1], [0, 0, 1, 1], [], []>} : vector<8x32xbf16>, vector<32x128xbf16>, vector<8x128xf32> -> vector<8x128xf32>
    %20 = arith.addf %17, %19 : vector<8x128xf32>
    %21 = vector.extract_strided_slice %20 {offsets = [0, 0], sizes = [8, 96], strides = [1, 1]} : vector<8x128xf32> to vector<8x96xf32>
    %cst_15 = arith.constant 5.000000e-01 : f32
    %22 = vector.broadcast %cst_15 : f32 to vector<8x96xf32>
    %23 = arith.mulf %22, %21 : vector<8x96xf32>
    %24 = math.tanh %23 : vector<8x96xf32>
    %cst_16 = arith.constant 5.000000e-01 : f32
    %25 = vector.broadcast %cst_16 : f32 to vector<8x96xf32>
    %26 = arith.mulf %25, %24 : vector<8x96xf32>
    %cst_17 = arith.constant 5.000000e-01 : f32
    %27 = vector.broadcast %cst_17 : f32 to vector<8x96xf32>
    %28 = arith.addf %26, %27 : vector<8x96xf32>
    %29 = vector.extract_strided_slice %20 {offsets = [0, 96], sizes = [8, 32], strides = [1, 1]} : vector<8x128xf32> to vector<8x32xf32>
    %30 = math.tanh %29 : vector<8x32xf32>
    %31 = vector.extract_strided_slice %28 {offsets = [0, 32], sizes = [8, 32], strides = [1, 1]} : vector<8x96xf32> to vector<8x32xf32>
    %32 = arith.mulf %31, %13 : vector<8x32xf32>
    %33 = vector.extract_strided_slice %28 {offsets = [0, 0], sizes = [8, 32], strides = [1, 1]} : vector<8x96xf32> to vector<8x32xf32>
    %34 = arith.mulf %33, %30 : vector<8x32xf32>
    %35 = arith.addf %32, %34 : vector<8x32xf32>
    %36 = vector.extract_strided_slice %28 {offsets = [0, 64], sizes = [8, 32], strides = [1, 1]} : vector<8x96xf32> to vector<8x32xf32>
    %37 = math.tanh %35 : vector<8x32xf32>
    %38 = arith.mulf %36, %37 : vector<8x32xf32>
    %39 = arith.truncf %38 : vector<8x32xf32> to vector<8x32xbf16>
    %40 = arith.index_cast %15 : i32 to index
    %c0_18 = arith.constant 0 : index
    %41 = vector.load %arg9[%40, %c0_18] : memref<64x32xbf16, #tpu.memory_space<vmem>>, vector<8x32xbf16>
    tpu.vector_store %arg9[%40, %c0_18], %39 {strides = array<i32>} : memref<64x32xbf16, #tpu.memory_space<vmem>>, vector<8x32xbf16>,
    %c1_i32 = arith.constant 1 : i32
    %c8_i32_19 = arith.constant 8 : i32
    %42 = arith.muli %c1_i32, %c8_i32_19 : i32
    %43 = tpu.assume_multiple %42, 8 : i32
    %44 = arith.index_cast %43 : i32 to index
    %c0_20 = arith.constant 0 : index
    %45 = vector.load %arg8[%44, %c0_20] : memref<64x128xf32, #tpu.memory_space<vmem>>, vector<8x128xf32>
    %46 = arith.truncf %38 : vector<8x32xf32> to vector<8x32xbf16>
    %cst_21 = arith.constant dense<0.000000e+00> : vector<8x128xf32>
    %47 = tpu.matmul %46, %11, %cst_21 {dimension_numbers = #tpu.dot_dimension_numbers<[1], [0], [0], [1], [0, 0, 1, 1], [], []>} : vector<8x32xbf16>, vector<32x128xbf16>, vector<8x128xf32> -> vector<8x128xf32>
    %48 = arith.addf %45, %47 : vector<8x128xf32>
    %49 = vector.extract_strided_slice %48 {offsets = [0, 0], sizes = [8, 96], strides = [1, 1]} : vector<8x128xf32> to vector<8x96xf32>
    %cst_22 = arith.constant 5.000000e-01 : f32
    %50 = vector.broadcast %cst_22 : f32 to vector<8x96xf32>
    %51 = arith.mulf %50, %49 : vector<8x96xf32>
    %52 = math.tanh %51 : vector<8x96xf32>
    %cst_23 = arith.constant 5.000000e-01 : f32
    %53 = vector.broadcast %cst_23 : f32 to vector<8x96xf32>
    %54 = arith.mulf %53, %52 : vector<8x96xf32>
    %cst_24 = arith.constant 5.000000e-01 : f32
    %55 = vector.broadcast %cst_24 : f32 to vector<8x96xf32>
    %56 = arith.addf %54, %55 : vector<8x96xf32>
    %57 = vector.extract_strided_slice %48 {offsets = [0, 96], sizes = [8, 32], strides = [1, 1]} : vector<8x128xf32> to vector<8x32xf32>
    %58 = math.tanh %57 : vector<8x32xf32>
    %59 = vector.extract_strided_slice %56 {offsets = [0, 32], sizes = [8, 32], strides = [1, 1]} : vector<8x96xf32> to vector<8x32xf32>
    %60 = arith.mulf %59, %35 : vector<8x32xf32>
    %61 = vector.extract_strided_slice %56 {offsets = [0, 0], sizes = [8, 32], strides = [1, 1]} : vector<8x96xf32> to vector<8x32xf32>
    %62 = arith.mulf %61, %58 : vector<8x32xf32>
    %63 = arith.addf %60, %62 : vector<8x32xf32>
    %64 = vector.extract_strided_slice %56 {offsets = [0, 64], sizes = [8, 32], strides = [1, 1]} : vector<8x96xf32> to vector<8x32xf32>
    %65 = math.tanh %63 : vector<8x32xf32>
    %66 = arith.mulf %64, %65 : vector<8x32xf32>
    %67 = arith.truncf %66 : vector<8x32xf32> to vector<8x32xbf16>
    %68 = arith.index_cast %43 : i32 to index
    %c0_25 = arith.constant 0 : index
    %69 = vector.load %arg9[%68, %c0_25] : memref<64x32xbf16, #tpu.memory_space<vmem>>, vector<8x32xbf16>
    tpu.vector_store %arg9[%68, %c0_25], %67 {strides = array<i32>} : memref<64x32xbf16, #tpu.memory_space<vmem>>, vector<8x32xbf16>,
    %c2_i32 = arith.constant 2 : i32
    %c8_i32_26 = arith.constant 8 : i32
    %70 = arith.muli %c2_i32, %c8_i32_26 : i32
    %71 = tpu.assume_multiple %70, 8 : i32
    %72 = arith.index_cast %71 : i32 to index
    %c0_27 = arith.constant 0 : index
    %73 = vector.load %arg8[%72, %c0_27] : memref<64x128xf32, #tpu.memory_space<vmem>>, vector<8x128xf32>
    %74 = arith.truncf %66 : vector<8x32xf32> to vector<8x32xbf16>
    %cst_28 = arith.constant dense<0.000000e+00> : vector<8x128xf32>
    %75 = tpu.matmul %74, %11, %cst_28 {dimension_numbers = #tpu.dot_dimension_numbers<[1], [0], [0], [1], [0, 0, 1, 1], [], []>} : vector<8x32xbf16>, vector<32x128xbf16>, vector<8x128xf32> -> vector<8x128xf32>
    %76 = arith.addf %73, %75 : vector<8x128xf32>
    %77 = vector.extract_strided_slice %76 {offsets = [0, 0], sizes = [8, 96], strides = [1, 1]} : vector<8x128xf32> to vector<8x96xf32>
    %cst_29 = arith.constant 5.000000e-01 : f32
    %78 = vector.broadcast %cst_29 : f32 to vector<8x96xf32>
    %79 = arith.mulf %78, %77 : vector<8x96xf32>
    %80 = math.tanh %79 : vector<8x96xf32>
    %cst_30 = arith.constant 5.000000e-01 : f32
    %81 = vector.broadcast %cst_30 : f32 to vector<8x96xf32>
    %82 = arith.mulf %81, %80 : vector<8x96xf32>
    %cst_31 = arith.constant 5.000000e-01 : f32
    %83 = vector.broadcast %cst_31 : f32 to vector<8x96xf32>
    %84 = arith.addf %82, %83 : vector<8x96xf32>
    %85 = vector.extract_strided_slice %76 {offsets = [0, 96], sizes = [8, 32], strides = [1, 1]} : vector<8x128xf32> to vector<8x32xf32>
    %86 = math.tanh %85 : vector<8x32xf32>
    %87 = vector.extract_strided_slice %84 {offsets = [0, 32], sizes = [8, 32], strides = [1, 1]} : vector<8x96xf32> to vector<8x32xf32>
    %88 = arith.mulf %87, %63 : vector<8x32xf32>
    %89 = vector.extract_strided_slice %84 {offsets = [0, 0], sizes = [8, 32], strides = [1, 1]} : vector<8x96xf32> to vector<8x32xf32>
    %90 = arith.mulf %89, %86 : vector<8x32xf32>
    %91 = arith.addf %88, %90 : vector<8x32xf32>
    %92 = vector.extract_strided_slice %84 {offsets = [0, 64], sizes = [8, 32], strides = [1, 1]} : vector<8x96xf32> to vector<8x32xf32>
    %93 = math.tanh %91 : vector<8x32xf32>
    %94 = arith.mulf %92, %93 : vector<8x32xf32>
    %95 = arith.truncf %94 : vector<8x32xf32> to vector<8x32xbf16>
    %96 = arith.index_cast %71 : i32 to index
    %c0_32 = arith.constant 0 : index
    %97 = vector.load %arg9[%96, %c0_32] : memref<64x32xbf16, #tpu.memory_space<vmem>>, vector<8x32xbf16>
    tpu.vector_store %arg9[%96, %c0_32], %95 {strides = array<i32>} : memref<64x32xbf16, #tpu.memory_space<vmem>>, vector<8x32xbf16>,
    %c3_i32 = arith.constant 3 : i32
    %c8_i32_33 = arith.constant 8 : i32
    %98 = arith.muli %c3_i32, %c8_i32_33 : i32
    %99 = tpu.assume_multiple %98, 8 : i32
    %100 = arith.index_cast %99 : i32 to index
    %c0_34 = arith.constant 0 : index
    %101 = vector.load %arg8[%100, %c0_34] : memref<64x128xf32, #tpu.memory_space<vmem>>, vector<8x128xf32>
    %102 = arith.truncf %94 : vector<8x32xf32> to vector<8x32xbf16>
    %cst_35 = arith.constant dense<0.000000e+00> : vector<8x128xf32>
    %103 = tpu.matmul %102, %11, %cst_35 {dimension_numbers = #tpu.dot_dimension_numbers<[1], [0], [0], [1], [0, 0, 1, 1], [], []>} : vector<8x32xbf16>, vector<32x128xbf16>, vector<8x128xf32> -> vector<8x128xf32>
    %104 = arith.addf %101, %103 : vector<8x128xf32>
    %105 = vector.extract_strided_slice %104 {offsets = [0, 0], sizes = [8, 96], strides = [1, 1]} : vector<8x128xf32> to vector<8x96xf32>
    %cst_36 = arith.constant 5.000000e-01 : f32
    %106 = vector.broadcast %cst_36 : f32 to vector<8x96xf32>
    %107 = arith.mulf %106, %105 : vector<8x96xf32>
    %108 = math.tanh %107 : vector<8x96xf32>
    %cst_37 = arith.constant 5.000000e-01 : f32
    %109 = vector.broadcast %cst_37 : f32 to vector<8x96xf32>
    %110 = arith.mulf %109, %108 : vector<8x96xf32>
    %cst_38 = arith.constant 5.000000e-01 : f32
    %111 = vector.broadcast %cst_38 : f32 to vector<8x96xf32>
    %112 = arith.addf %110, %111 : vector<8x96xf32>
    %113 = vector.extract_strided_slice %104 {offsets = [0, 96], sizes = [8, 32], strides = [1, 1]} : vector<8x128xf32> to vector<8x32xf32>
    %114 = math.tanh %113 : vector<8x32xf32>
    %115 = vector.extract_strided_slice %112 {offsets = [0, 32], sizes = [8, 32], strides = [1, 1]} : vector<8x96xf32> to vector<8x32xf32>
    %116 = arith.mulf %115, %91 : vector<8x32xf32>
    %117 = vector.extract_strided_slice %112 {offsets = [0, 0], sizes = [8, 32], strides = [1, 1]} : vector<8x96xf32> to vector<8x32xf32>
    %118 = arith.mulf %117, %114 : vector<8x32xf32>
    %119 = arith.addf %116, %118 : vector<8x32xf32>
    %120 = vector.extract_strided_slice %112 {offsets = [0, 64], sizes = [8, 32], strides = [1, 1]} : vector<8x96xf32> to vector<8x32xf32>
    %121 = math.tanh %119 : vector<8x32xf32>
    %122 = arith.mulf %120, %121 : vector<8x32xf32>
    %123 = arith.truncf %122 : vector<8x32xf32> to vector<8x32xbf16>
    %124 = arith.index_cast %99 : i32 to index
    %c0_39 = arith.constant 0 : index
    %125 = vector.load %arg9[%124, %c0_39] : memref<64x32xbf16, #tpu.memory_space<vmem>>, vector<8x32xbf16>
    tpu.vector_store %arg9[%124, %c0_39], %123 {strides = array<i32>} : memref<64x32xbf16, #tpu.memory_space<vmem>>, vector<8x32xbf16>,
    %c4_i32 = arith.constant 4 : i32
    %c8_i32_40 = arith.constant 8 : i32
    %126 = arith.muli %c4_i32, %c8_i32_40 : i32
    %127 = tpu.assume_multiple %126, 8 : i32
    %128 = arith.index_cast %127 : i32 to index
    %c0_41 = arith.constant 0 : index
    %129 = vector.load %arg8[%128, %c0_41] : memref<64x128xf32, #tpu.memory_space<vmem>>, vector<8x128xf32>
    %130 = arith.truncf %122 : vector<8x32xf32> to vector<8x32xbf16>
    %cst_42 = arith.constant dense<0.000000e+00> : vector<8x128xf32>
    %131 = tpu.matmul %130, %11, %cst_42 {dimension_numbers = #tpu.dot_dimension_numbers<[1], [0], [0], [1], [0, 0, 1, 1], [], []>} : vector<8x32xbf16>, vector<32x128xbf16>, vector<8x128xf32> -> vector<8x128xf32>
    %132 = arith.addf %129, %131 : vector<8x128xf32>
    %133 = vector.extract_strided_slice %132 {offsets = [0, 0], sizes = [8, 96], strides = [1, 1]} : vector<8x128xf32> to vector<8x96xf32>
    %cst_43 = arith.constant 5.000000e-01 : f32
    %134 = vector.broadcast %cst_43 : f32 to vector<8x96xf32>
    %135 = arith.mulf %134, %133 : vector<8x96xf32>
    %136 = math.tanh %135 : vector<8x96xf32>
    %cst_44 = arith.constant 5.000000e-01 : f32
    %137 = vector.broadcast %cst_44 : f32 to vector<8x96xf32>
    %138 = arith.mulf %137, %136 : vector<8x96xf32>
    %cst_45 = arith.constant 5.000000e-01 : f32
    %139 = vector.broadcast %cst_45 : f32 to vector<8x96xf32>
    %140 = arith.addf %138, %139 : vector<8x96xf32>
    %141 = vector.extract_strided_slice %132 {offsets = [0, 96], sizes = [8, 32], strides = [1, 1]} : vector<8x128xf32> to vector<8x32xf32>
    %142 = math.tanh %141 : vector<8x32xf32>
    %143 = vector.extract_strided_slice %140 {offsets = [0, 32], sizes = [8, 32], strides = [1, 1]} : vector<8x96xf32> to vector<8x32xf32>
    %144 = arith.mulf %143, %119 : vector<8x32xf32>
    %145 = vector.extract_strided_slice %140 {offsets = [0, 0], sizes = [8, 32], strides = [1, 1]} : vector<8x96xf32> to vector<8x32xf32>
    %146 = arith.mulf %145, %142 : vector<8x32xf32>
    %147 = arith.addf %144, %146 : vector<8x32xf32>
    %148 = vector.extract_strided_slice %140 {offsets = [0, 64], sizes = [8, 32], strides = [1, 1]} : vector<8x96xf32> to vector<8x32xf32>
    %149 = math.tanh %147 : vector<8x32xf32>
    %150 = arith.mulf %148, %149 : vector<8x32xf32>
    %151 = arith.truncf %150 : vector<8x32xf32> to vector<8x32xbf16>
    %152 = arith.index_cast %127 : i32 to index
    %c0_46 = arith.constant 0 : index
    %153 = vector.load %arg9[%152, %c0_46] : memref<64x32xbf16, #tpu.memory_space<vmem>>, vector<8x32xbf16>
    tpu.vector_store %arg9[%152, %c0_46], %151 {strides = array<i32>} : memref<64x32xbf16, #tpu.memory_space<vmem>>, vector<8x32xbf16>,
    %c5_i32 = arith.constant 5 : i32
    %c8_i32_47 = arith.constant 8 : i32
    %154 = arith.muli %c5_i32, %c8_i32_47 : i32
    %155 = tpu.assume_multiple %154, 8 : i32
    %156 = arith.index_cast %155 : i32 to index
    %c0_48 = arith.constant 0 : index
    %157 = vector.load %arg8[%156, %c0_48] : memref<64x128xf32, #tpu.memory_space<vmem>>, vector<8x128xf32>
    %158 = arith.truncf %150 : vector<8x32xf32> to vector<8x32xbf16>
    %cst_49 = arith.constant dense<0.000000e+00> : vector<8x128xf32>
    %159 = tpu.matmul %158, %11, %cst_49 {dimension_numbers = #tpu.dot_dimension_numbers<[1], [0], [0], [1], [0, 0, 1, 1], [], []>} : vector<8x32xbf16>, vector<32x128xbf16>, vector<8x128xf32> -> vector<8x128xf32>
    %160 = arith.addf %157, %159 : vector<8x128xf32>
    %161 = vector.extract_strided_slice %160 {offsets = [0, 0], sizes = [8, 96], strides = [1, 1]} : vector<8x128xf32> to vector<8x96xf32>
    %cst_50 = arith.constant 5.000000e-01 : f32
    %162 = vector.broadcast %cst_50 : f32 to vector<8x96xf32>
    %163 = arith.mulf %162, %161 : vector<8x96xf32>
    %164 = math.tanh %163 : vector<8x96xf32>
    %cst_51 = arith.constant 5.000000e-01 : f32
    %165 = vector.broadcast %cst_51 : f32 to vector<8x96xf32>
    %166 = arith.mulf %165, %164 : vector<8x96xf32>
    %cst_52 = arith.constant 5.000000e-01 : f32
    %167 = vector.broadcast %cst_52 : f32 to vector<8x96xf32>
    %168 = arith.addf %166, %167 : vector<8x96xf32>
    %169 = vector.extract_strided_slice %160 {offsets = [0, 96], sizes = [8, 32], strides = [1, 1]} : vector<8x128xf32> to vector<8x32xf32>
    %170 = math.tanh %169 : vector<8x32xf32>
    %171 = vector.extract_strided_slice %168 {offsets = [0, 32], sizes = [8, 32], strides = [1, 1]} : vector<8x96xf32> to vector<8x32xf32>
    %172 = arith.mulf %171, %147 : vector<8x32xf32>
    %173 = vector.extract_strided_slice %168 {offsets = [0, 0], sizes = [8, 32], strides = [1, 1]} : vector<8x96xf32> to vector<8x32xf32>
    %174 = arith.mulf %173, %170 : vector<8x32xf32>
    %175 = arith.addf %172, %174 : vector<8x32xf32>
    %176 = vector.extract_strided_slice %168 {offsets = [0, 64], sizes = [8, 32], strides = [1, 1]} : vector<8x96xf32> to vector<8x32xf32>
    %177 = math.tanh %175 : vector<8x32xf32>
    %178 = arith.mulf %176, %177 : vector<8x32xf32>
    %179 = arith.truncf %178 : vector<8x32xf32> to vector<8x32xbf16>
    %180 = arith.index_cast %155 : i32 to index
    %c0_53 = arith.constant 0 : index
    %181 = vector.load %arg9[%180, %c0_53] : memref<64x32xbf16, #tpu.memory_space<vmem>>, vector<8x32xbf16>
    tpu.vector_store %arg9[%180, %c0_53], %179 {strides = array<i32>} : memref<64x32xbf16, #tpu.memory_space<vmem>>, vector<8x32xbf16>,
    %c6_i32 = arith.constant 6 : i32
    %c8_i32_54 = arith.constant 8 : i32
    %182 = arith.muli %c6_i32, %c8_i32_54 : i32
    %183 = tpu.assume_multiple %182, 8 : i32
    %184 = arith.index_cast %183 : i32 to index
    %c0_55 = arith.constant 0 : index
    %185 = vector.load %arg8[%184, %c0_55] : memref<64x128xf32, #tpu.memory_space<vmem>>, vector<8x128xf32>
    %186 = arith.truncf %178 : vector<8x32xf32> to vector<8x32xbf16>
    %cst_56 = arith.constant dense<0.000000e+00> : vector<8x128xf32>
    %187 = tpu.matmul %186, %11, %cst_56 {dimension_numbers = #tpu.dot_dimension_numbers<[1], [0], [0], [1], [0, 0, 1, 1], [], []>} : vector<8x32xbf16>, vector<32x128xbf16>, vector<8x128xf32> -> vector<8x128xf32>
    %188 = arith.addf %185, %187 : vector<8x128xf32>
    %189 = vector.extract_strided_slice %188 {offsets = [0, 0], sizes = [8, 96], strides = [1, 1]} : vector<8x128xf32> to vector<8x96xf32>
    %cst_57 = arith.constant 5.000000e-01 : f32
    %190 = vector.broadcast %cst_57 : f32 to vector<8x96xf32>
    %191 = arith.mulf %190, %189 : vector<8x96xf32>
    %192 = math.tanh %191 : vector<8x96xf32>
    %cst_58 = arith.constant 5.000000e-01 : f32
    %193 = vector.broadcast %cst_58 : f32 to vector<8x96xf32>
    %194 = arith.mulf %193, %192 : vector<8x96xf32>
    %cst_59 = arith.constant 5.000000e-01 : f32
    %195 = vector.broadcast %cst_59 : f32 to vector<8x96xf32>
    %196 = arith.addf %194, %195 : vector<8x96xf32>
    %197 = vector.extract_strided_slice %188 {offsets = [0, 96], sizes = [8, 32], strides = [1, 1]} : vector<8x128xf32> to vector<8x32xf32>
    %198 = math.tanh %197 : vector<8x32xf32>
    %199 = vector.extract_strided_slice %196 {offsets = [0, 32], sizes = [8, 32], strides = [1, 1]} : vector<8x96xf32> to vector<8x32xf32>
    %200 = arith.mulf %199, %175 : vector<8x32xf32>
    %201 = vector.extract_strided_slice %196 {offsets = [0, 0], sizes = [8, 32], strides = [1, 1]} : vector<8x96xf32> to vector<8x32xf32>
    %202 = arith.mulf %201, %198 : vector<8x32xf32>
    %203 = arith.addf %200, %202 : vector<8x32xf32>
    %204 = vector.extract_strided_slice %196 {offsets = [0, 64], sizes = [8, 32], strides = [1, 1]} : vector<8x96xf32> to vector<8x32xf32>
    %205 = math.tanh %203 : vector<8x32xf32>
    %206 = arith.mulf %204, %205 : vector<8x32xf32>
    %207 = arith.truncf %206 : vector<8x32xf32> to vector<8x32xbf16>
    %208 = arith.index_cast %183 : i32 to index
    %c0_60 = arith.constant 0 : index
    %209 = vector.load %arg9[%208, %c0_60] : memref<64x32xbf16, #tpu.memory_space<vmem>>, vector<8x32xbf16>
    tpu.vector_store %arg9[%208, %c0_60], %207 {strides = array<i32>} : memref<64x32xbf16, #tpu.memory_space<vmem>>, vector<8x32xbf16>,
    %c7_i32 = arith.constant 7 : i32
    %c8_i32_61 = arith.constant 8 : i32
    %210 = arith.muli %c7_i32, %c8_i32_61 : i32
    %211 = tpu.assume_multiple %210, 8 : i32
    %212 = arith.index_cast %211 : i32 to index
    %c0_62 = arith.constant 0 : index
    %213 = vector.load %arg8[%212, %c0_62] : memref<64x128xf32, #tpu.memory_space<vmem>>, vector<8x128xf32>
    %214 = arith.truncf %206 : vector<8x32xf32> to vector<8x32xbf16>
    %cst_63 = arith.constant dense<0.000000e+00> : vector<8x128xf32>
    %215 = tpu.matmul %214, %11, %cst_63 {dimension_numbers = #tpu.dot_dimension_numbers<[1], [0], [0], [1], [0, 0, 1, 1], [], []>} : vector<8x32xbf16>, vector<32x128xbf16>, vector<8x128xf32> -> vector<8x128xf32>
    %216 = arith.addf %213, %215 : vector<8x128xf32>
    %217 = vector.extract_strided_slice %216 {offsets = [0, 0], sizes = [8, 96], strides = [1, 1]} : vector<8x128xf32> to vector<8x96xf32>
    %cst_64 = arith.constant 5.000000e-01 : f32
    %218 = vector.broadcast %cst_64 : f32 to vector<8x96xf32>
    %219 = arith.mulf %218, %217 : vector<8x96xf32>
    %220 = math.tanh %219 : vector<8x96xf32>
    %cst_65 = arith.constant 5.000000e-01 : f32
    %221 = vector.broadcast %cst_65 : f32 to vector<8x96xf32>
    %222 = arith.mulf %221, %220 : vector<8x96xf32>
    %cst_66 = arith.constant 5.000000e-01 : f32
    %223 = vector.broadcast %cst_66 : f32 to vector<8x96xf32>
    %224 = arith.addf %222, %223 : vector<8x96xf32>
    %225 = vector.extract_strided_slice %216 {offsets = [0, 96], sizes = [8, 32], strides = [1, 1]} : vector<8x128xf32> to vector<8x32xf32>
    %226 = math.tanh %225 : vector<8x32xf32>
    %227 = vector.extract_strided_slice %224 {offsets = [0, 32], sizes = [8, 32], strides = [1, 1]} : vector<8x96xf32> to vector<8x32xf32>
    %228 = arith.mulf %227, %203 : vector<8x32xf32>
    %229 = vector.extract_strided_slice %224 {offsets = [0, 0], sizes = [8, 32], strides = [1, 1]} : vector<8x96xf32> to vector<8x32xf32>
    %230 = arith.mulf %229, %226 : vector<8x32xf32>
    %231 = arith.addf %228, %230 : vector<8x32xf32>
    %232 = vector.extract_strided_slice %224 {offsets = [0, 64], sizes = [8, 32], strides = [1, 1]} : vector<8x96xf32> to vector<8x32xf32>
    %233 = math.tanh %231 : vector<8x32xf32>
    %234 = arith.mulf %232, %233 : vector<8x32xf32>
    %235 = arith.truncf %234 : vector<8x32xf32> to vector<8x32xbf16>
    %236 = arith.index_cast %211 : i32 to index
    %c0_67 = arith.constant 0 : index
    %237 = vector.load %arg9[%236, %c0_67] : memref<64x32xbf16, #tpu.memory_space<vmem>>, vector<8x32xbf16>
    tpu.vector_store %arg9[%236, %c0_67], %235 {strides = array<i32>} : memref<64x32xbf16, #tpu.memory_space<vmem>>, vector<8x32xbf16>,
    %c8_i32_68 = arith.constant 8 : i32
    %238 = math.tanh %234 : vector<8x32xf32>
    %239 = math.tanh %231 : vector<8x32xf32>
    %c0_69 = arith.constant 0 : index
    %c0_70 = arith.constant 0 : index
    %240 = vector.load %arg9[%c0_69, %c0_70] : memref<64x32xbf16, #tpu.memory_space<vmem>>, vector<64x32xbf16>
    %c0_71 = arith.constant 0 : index
    %c0_72 = arith.constant 0 : index
    %c0_73 = arith.constant 0 : index
    %241 = vector.load %arg2[%c0_71, %c0_72, %c0_73] : memref<1x32x128xbf16, #tpu.memory_space<vmem>>, vector<1x32x128xbf16>
    %242 = vector.shape_cast %241 : vector<1x32x128xbf16> to vector<32x128xbf16>
    %cst_74 = arith.constant dense<0.000000e+00> : vector<64x128xf32>
    %243 = tpu.matmul %240, %242, %cst_74 {dimension_numbers = #tpu.dot_dimension_numbers<[1], [0], [0], [1], [0, 0, 1, 1], [], []>} : vector<64x32xbf16>, vector<32x128xbf16>, vector<64x128xf32> -> vector<64x128xf32>
    %c1 = arith.constant 1 : index
    %c0_75 = arith.constant 0 : index
    %c0_76 = arith.constant 0 : index
    %244 = vector.load %arg4[%c1, %c0_75, %c0_76] : memref<2x1x128xf32, #tpu.memory_space<vmem>>, vector<1x1x128xf32>
    %245 = vector.shape_cast %244 : vector<1x1x128xf32> to vector<1x128xf32>
    %246 = vector.broadcast %245 : vector<1x128xf32> to vector<64x128xf32>
    %247 = arith.addf %243, %246 : vector<64x128xf32>
    %c0_77 = arith.constant 0 : index
    %c0_78 = arith.constant 0 : index
    %248 = vector.load %arg8[%c0_77, %c0_78] : memref<64x128xf32, #tpu.memory_space<vmem>>, vector<64x128xf32>
    tpu.vector_store %arg8[%c0_77, %c0_78], %247 {strides = array<i32>} : memref<64x128xf32, #tpu.memory_space<vmem>>, vector<64x128xf32>,
    %c1_79 = arith.constant 1 : index
    %c0_80 = arith.constant 0 : index
    %c0_81 = arith.constant 0 : index
    %249 = vector.load %arg3[%c1_79, %c0_80, %c0_81] : memref<2x32x128xbf16, #tpu.memory_space<vmem>>, vector<1x32x128xbf16>
    %250 = vector.shape_cast %249 : vector<1x32x128xbf16> to vector<32x128xbf16>
    %cst_82 = arith.constant 0.000000e+00 : f32
    %251 = vector.broadcast %cst_82 : f32 to vector<8x32xf32>
    %cst_83 = arith.constant 0.000000e+00 : f32
    %252 = vector.broadcast %cst_83 : f32 to vector<8x32xf32>
    %c0_i32_84 = arith.constant 0 : i32
    %c8_i32_85 = arith.constant 8 : i32
    %253 = arith.muli %c0_i32_84, %c8_i32_85 : i32
    %254 = tpu.assume_multiple %253, 8 : i32
    %255 = arith.index_cast %254 : i32 to index
    %c0_86 = arith.constant 0 : index
    %256 = vector.load %arg8[%255, %c0_86] : memref<64x128xf32, #tpu.memory_space<vmem>>, vector<8x128xf32>
    %257 = arith.truncf %251 : vector<8x32xf32> to vector<8x32xbf16>
    %cst_87 = arith.constant dense<0.000000e+00> : vector<8x128xf32>
    %258 = tpu.matmul %257, %250, %cst_87 {dimension_numbers = #tpu.dot_dimension_numbers<[1], [0], [0], [1], [0, 0, 1, 1], [], []>} : vector<8x32xbf16>, vector<32x128xbf16>, vector<8x128xf32> -> vector<8x128xf32>
    %259 = arith.addf %256, %258 : vector<8x128xf32>
    %260 = vector.extract_strided_slice %259 {offsets = [0, 0], sizes = [8, 96], strides = [1, 1]} : vector<8x128xf32> to vector<8x96xf32>
    %cst_88 = arith.constant 5.000000e-01 : f32
    %261 = vector.broadcast %cst_88 : f32 to vector<8x96xf32>
    %262 = arith.mulf %261, %260 : vector<8x96xf32>
    %263 = math.tanh %262 : vector<8x96xf32>
    %cst_89 = arith.constant 5.000000e-01 : f32
    %264 = vector.broadcast %cst_89 : f32 to vector<8x96xf32>
    %265 = arith.mulf %264, %263 : vector<8x96xf32>
    %cst_90 = arith.constant 5.000000e-01 : f32
    %266 = vector.broadcast %cst_90 : f32 to vector<8x96xf32>
    %267 = arith.addf %265, %266 : vector<8x96xf32>
    %268 = vector.extract_strided_slice %259 {offsets = [0, 96], sizes = [8, 32], strides = [1, 1]} : vector<8x128xf32> to vector<8x32xf32>
    %269 = math.tanh %268 : vector<8x32xf32>
    %270 = vector.extract_strided_slice %267 {offsets = [0, 32], sizes = [8, 32], strides = [1, 1]} : vector<8x96xf32> to vector<8x32xf32>
    %271 = arith.mulf %270, %252 : vector<8x32xf32>
    %272 = vector.extract_strided_slice %267 {offsets = [0, 0], sizes = [8, 32], strides = [1, 1]} : vector<8x96xf32> to vector<8x32xf32>
    %273 = arith.mulf %272, %269 : vector<8x32xf32>
    %274 = arith.addf %271, %273 : vector<8x32xf32>
    %275 = vector.extract_strided_slice %267 {offsets = [0, 64], sizes = [8, 32], strides = [1, 1]} : vector<8x96xf32> to vector<8x32xf32>
    %276 = math.tanh %274 : vector<8x32xf32>
    %277 = arith.mulf %275, %276 : vector<8x32xf32>
    %c1_i32_91 = arith.constant 1 : i32
    %c8_i32_92 = arith.constant 8 : i32
    %278 = arith.muli %c1_i32_91, %c8_i32_92 : i32
    %279 = tpu.assume_multiple %278, 8 : i32
    %280 = arith.index_cast %279 : i32 to index
    %c0_93 = arith.constant 0 : index
    %281 = vector.load %arg8[%280, %c0_93] : memref<64x128xf32, #tpu.memory_space<vmem>>, vector<8x128xf32>
    %282 = arith.truncf %277 : vector<8x32xf32> to vector<8x32xbf16>
    %cst_94 = arith.constant dense<0.000000e+00> : vector<8x128xf32>
    %283 = tpu.matmul %282, %250, %cst_94 {dimension_numbers = #tpu.dot_dimension_numbers<[1], [0], [0], [1], [0, 0, 1, 1], [], []>} : vector<8x32xbf16>, vector<32x128xbf16>, vector<8x128xf32> -> vector<8x128xf32>
    %284 = arith.addf %281, %283 : vector<8x128xf32>
    %285 = vector.extract_strided_slice %284 {offsets = [0, 0], sizes = [8, 96], strides = [1, 1]} : vector<8x128xf32> to vector<8x96xf32>
    %cst_95 = arith.constant 5.000000e-01 : f32
    %286 = vector.broadcast %cst_95 : f32 to vector<8x96xf32>
    %287 = arith.mulf %286, %285 : vector<8x96xf32>
    %288 = math.tanh %287 : vector<8x96xf32>
    %cst_96 = arith.constant 5.000000e-01 : f32
    %289 = vector.broadcast %cst_96 : f32 to vector<8x96xf32>
    %290 = arith.mulf %289, %288 : vector<8x96xf32>
    %cst_97 = arith.constant 5.000000e-01 : f32
    %291 = vector.broadcast %cst_97 : f32 to vector<8x96xf32>
    %292 = arith.addf %290, %291 : vector<8x96xf32>
    %293 = vector.extract_strided_slice %284 {offsets = [0, 96], sizes = [8, 32], strides = [1, 1]} : vector<8x128xf32> to vector<8x32xf32>
    %294 = math.tanh %293 : vector<8x32xf32>
    %295 = vector.extract_strided_slice %292 {offsets = [0, 32], sizes = [8, 32], strides = [1, 1]} : vector<8x96xf32> to vector<8x32xf32>
    %296 = arith.mulf %295, %274 : vector<8x32xf32>
    %297 = vector.extract_strided_slice %292 {offsets = [0, 0], sizes = [8, 32], strides = [1, 1]} : vector<8x96xf32> to vector<8x32xf32>
    %298 = arith.mulf %297, %294 : vector<8x32xf32>
    %299 = arith.addf %296, %298 : vector<8x32xf32>
    %300 = vector.extract_strided_slice %292 {offsets = [0, 64], sizes = [8, 32], strides = [1, 1]} : vector<8x96xf32> to vector<8x32xf32>
    %301 = math.tanh %299 : vector<8x32xf32>
    %302 = arith.mulf %300, %301 : vector<8x32xf32>
    %c2_i32_98 = arith.constant 2 : i32
    %c8_i32_99 = arith.constant 8 : i32
    %303 = arith.muli %c2_i32_98, %c8_i32_99 : i32
    %304 = tpu.assume_multiple %303, 8 : i32
    %305 = arith.index_cast %304 : i32 to index
    %c0_100 = arith.constant 0 : index
    %306 = vector.load %arg8[%305, %c0_100] : memref<64x128xf32, #tpu.memory_space<vmem>>, vector<8x128xf32>
    %307 = arith.truncf %302 : vector<8x32xf32> to vector<8x32xbf16>
    %cst_101 = arith.constant dense<0.000000e+00> : vector<8x128xf32>
    %308 = tpu.matmul %307, %250, %cst_101 {dimension_numbers = #tpu.dot_dimension_numbers<[1], [0], [0], [1], [0, 0, 1, 1], [], []>} : vector<8x32xbf16>, vector<32x128xbf16>, vector<8x128xf32> -> vector<8x128xf32>
    %309 = arith.addf %306, %308 : vector<8x128xf32>
    %310 = vector.extract_strided_slice %309 {offsets = [0, 0], sizes = [8, 96], strides = [1, 1]} : vector<8x128xf32> to vector<8x96xf32>
    %cst_102 = arith.constant 5.000000e-01 : f32
    %311 = vector.broadcast %cst_102 : f32 to vector<8x96xf32>
    %312 = arith.mulf %311, %310 : vector<8x96xf32>
    %313 = math.tanh %312 : vector<8x96xf32>
    %cst_103 = arith.constant 5.000000e-01 : f32
    %314 = vector.broadcast %cst_103 : f32 to vector<8x96xf32>
    %315 = arith.mulf %314, %313 : vector<8x96xf32>
    %cst_104 = arith.constant 5.000000e-01 : f32
    %316 = vector.broadcast %cst_104 : f32 to vector<8x96xf32>
    %317 = arith.addf %315, %316 : vector<8x96xf32>
    %318 = vector.extract_strided_slice %309 {offsets = [0, 96], sizes = [8, 32], strides = [1, 1]} : vector<8x128xf32> to vector<8x32xf32>
    %319 = math.tanh %318 : vector<8x32xf32>
    %320 = vector.extract_strided_slice %317 {offsets = [0, 32], sizes = [8, 32], strides = [1, 1]} : vector<8x96xf32> to vector<8x32xf32>
    %321 = arith.mulf %320, %299 : vector<8x32xf32>
    %322 = vector.extract_strided_slice %317 {offsets = [0, 0], sizes = [8, 32], strides = [1, 1]} : vector<8x96xf32> to vector<8x32xf32>
    %323 = arith.mulf %322, %319 : vector<8x32xf32>
    %324 = arith.addf %321, %323 : vector<8x32xf32>
    %325 = vector.extract_strided_slice %317 {offsets = [0, 64], sizes = [8, 32], strides = [1, 1]} : vector<8x96xf32> to vector<8x32xf32>
    %326 = math.tanh %324 : vector<8x32xf32>
    %327 = arith.mulf %325, %326 : vector<8x32xf32>
    %c3_i32_105 = arith.constant 3 : i32
    %c8_i32_106 = arith.constant 8 : i32
    %328 = arith.muli %c3_i32_105, %c8_i32_106 : i32
    %329 = tpu.assume_multiple %328, 8 : i32
    %330 = arith.index_cast %329 : i32 to index
    %c0_107 = arith.constant 0 : index
    %331 = vector.load %arg8[%330, %c0_107] : memref<64x128xf32, #tpu.memory_space<vmem>>, vector<8x128xf32>
    %332 = arith.truncf %327 : vector<8x32xf32> to vector<8x32xbf16>
    %cst_108 = arith.constant dense<0.000000e+00> : vector<8x128xf32>
    %333 = tpu.matmul %332, %250, %cst_108 {dimension_numbers = #tpu.dot_dimension_numbers<[1], [0], [0], [1], [0, 0, 1, 1], [], []>} : vector<8x32xbf16>, vector<32x128xbf16>, vector<8x128xf32> -> vector<8x128xf32>
    %334 = arith.addf %331, %333 : vector<8x128xf32>
    %335 = vector.extract_strided_slice %334 {offsets = [0, 0], sizes = [8, 96], strides = [1, 1]} : vector<8x128xf32> to vector<8x96xf32>
    %cst_109 = arith.constant 5.000000e-01 : f32
    %336 = vector.broadcast %cst_109 : f32 to vector<8x96xf32>
    %337 = arith.mulf %336, %335 : vector<8x96xf32>
    %338 = math.tanh %337 : vector<8x96xf32>
    %cst_110 = arith.constant 5.000000e-01 : f32
    %339 = vector.broadcast %cst_110 : f32 to vector<8x96xf32>
    %340 = arith.mulf %339, %338 : vector<8x96xf32>
    %cst_111 = arith.constant 5.000000e-01 : f32
    %341 = vector.broadcast %cst_111 : f32 to vector<8x96xf32>
    %342 = arith.addf %340, %341 : vector<8x96xf32>
    %343 = vector.extract_strided_slice %334 {offsets = [0, 96], sizes = [8, 32], strides = [1, 1]} : vector<8x128xf32> to vector<8x32xf32>
    %344 = math.tanh %343 : vector<8x32xf32>
    %345 = vector.extract_strided_slice %342 {offsets = [0, 32], sizes = [8, 32], strides = [1, 1]} : vector<8x96xf32> to vector<8x32xf32>
    %346 = arith.mulf %345, %324 : vector<8x32xf32>
    %347 = vector.extract_strided_slice %342 {offsets = [0, 0], sizes = [8, 32], strides = [1, 1]} : vector<8x96xf32> to vector<8x32xf32>
    %348 = arith.mulf %347, %344 : vector<8x32xf32>
    %349 = arith.addf %346, %348 : vector<8x32xf32>
    %350 = vector.extract_strided_slice %342 {offsets = [0, 64], sizes = [8, 32], strides = [1, 1]} : vector<8x96xf32> to vector<8x32xf32>
    %351 = math.tanh %349 : vector<8x32xf32>
    %352 = arith.mulf %350, %351 : vector<8x32xf32>
    %c4_i32_112 = arith.constant 4 : i32
    %c8_i32_113 = arith.constant 8 : i32
    %353 = arith.muli %c4_i32_112, %c8_i32_113 : i32
    %354 = tpu.assume_multiple %353, 8 : i32
    %355 = arith.index_cast %354 : i32 to index
    %c0_114 = arith.constant 0 : index
    %356 = vector.load %arg8[%355, %c0_114] : memref<64x128xf32, #tpu.memory_space<vmem>>, vector<8x128xf32>
    %357 = arith.truncf %352 : vector<8x32xf32> to vector<8x32xbf16>
    %cst_115 = arith.constant dense<0.000000e+00> : vector<8x128xf32>
    %358 = tpu.matmul %357, %250, %cst_115 {dimension_numbers = #tpu.dot_dimension_numbers<[1], [0], [0], [1], [0, 0, 1, 1], [], []>} : vector<8x32xbf16>, vector<32x128xbf16>, vector<8x128xf32> -> vector<8x128xf32>
    %359 = arith.addf %356, %358 : vector<8x128xf32>
    %360 = vector.extract_strided_slice %359 {offsets = [0, 0], sizes = [8, 96], strides = [1, 1]} : vector<8x128xf32> to vector<8x96xf32>
    %cst_116 = arith.constant 5.000000e-01 : f32
    %361 = vector.broadcast %cst_116 : f32 to vector<8x96xf32>
    %362 = arith.mulf %361, %360 : vector<8x96xf32>
    %363 = math.tanh %362 : vector<8x96xf32>
    %cst_117 = arith.constant 5.000000e-01 : f32
    %364 = vector.broadcast %cst_117 : f32 to vector<8x96xf32>
    %365 = arith.mulf %364, %363 : vector<8x96xf32>
    %cst_118 = arith.constant 5.000000e-01 : f32
    %366 = vector.broadcast %cst_118 : f32 to vector<8x96xf32>
    %367 = arith.addf %365, %366 : vector<8x96xf32>
    %368 = vector.extract_strided_slice %359 {offsets = [0, 96], sizes = [8, 32], strides = [1, 1]} : vector<8x128xf32> to vector<8x32xf32>
    %369 = math.tanh %368 : vector<8x32xf32>
    %370 = vector.extract_strided_slice %367 {offsets = [0, 32], sizes = [8, 32], strides = [1, 1]} : vector<8x96xf32> to vector<8x32xf32>
    %371 = arith.mulf %370, %349 : vector<8x32xf32>
    %372 = vector.extract_strided_slice %367 {offsets = [0, 0], sizes = [8, 32], strides = [1, 1]} : vector<8x96xf32> to vector<8x32xf32>
    %373 = arith.mulf %372, %369 : vector<8x32xf32>
    %374 = arith.addf %371, %373 : vector<8x32xf32>
    %375 = vector.extract_strided_slice %367 {offsets = [0, 64], sizes = [8, 32], strides = [1, 1]} : vector<8x96xf32> to vector<8x32xf32>
    %376 = math.tanh %374 : vector<8x32xf32>
    %377 = arith.mulf %375, %376 : vector<8x32xf32>
    %c5_i32_119 = arith.constant 5 : i32
    %c8_i32_120 = arith.constant 8 : i32
    %378 = arith.muli %c5_i32_119, %c8_i32_120 : i32
    %379 = tpu.assume_multiple %378, 8 : i32
    %380 = arith.index_cast %379 : i32 to index
    %c0_121 = arith.constant 0 : index
    %381 = vector.load %arg8[%380, %c0_121] : memref<64x128xf32, #tpu.memory_space<vmem>>, vector<8x128xf32>
    %382 = arith.truncf %377 : vector<8x32xf32> to vector<8x32xbf16>
    %cst_122 = arith.constant dense<0.000000e+00> : vector<8x128xf32>
    %383 = tpu.matmul %382, %250, %cst_122 {dimension_numbers = #tpu.dot_dimension_numbers<[1], [0], [0], [1], [0, 0, 1, 1], [], []>} : vector<8x32xbf16>, vector<32x128xbf16>, vector<8x128xf32> -> vector<8x128xf32>
    %384 = arith.addf %381, %383 : vector<8x128xf32>
    %385 = vector.extract_strided_slice %384 {offsets = [0, 0], sizes = [8, 96], strides = [1, 1]} : vector<8x128xf32> to vector<8x96xf32>
    %cst_123 = arith.constant 5.000000e-01 : f32
    %386 = vector.broadcast %cst_123 : f32 to vector<8x96xf32>
    %387 = arith.mulf %386, %385 : vector<8x96xf32>
    %388 = math.tanh %387 : vector<8x96xf32>
    %cst_124 = arith.constant 5.000000e-01 : f32
    %389 = vector.broadcast %cst_124 : f32 to vector<8x96xf32>
    %390 = arith.mulf %389, %388 : vector<8x96xf32>
    %cst_125 = arith.constant 5.000000e-01 : f32
    %391 = vector.broadcast %cst_125 : f32 to vector<8x96xf32>
    %392 = arith.addf %390, %391 : vector<8x96xf32>
    %393 = vector.extract_strided_slice %384 {offsets = [0, 96], sizes = [8, 32], strides = [1, 1]} : vector<8x128xf32> to vector<8x32xf32>
    %394 = math.tanh %393 : vector<8x32xf32>
    %395 = vector.extract_strided_slice %392 {offsets = [0, 32], sizes = [8, 32], strides = [1, 1]} : vector<8x96xf32> to vector<8x32xf32>
    %396 = arith.mulf %395, %374 : vector<8x32xf32>
    %397 = vector.extract_strided_slice %392 {offsets = [0, 0], sizes = [8, 32], strides = [1, 1]} : vector<8x96xf32> to vector<8x32xf32>
    %398 = arith.mulf %397, %394 : vector<8x32xf32>
    %399 = arith.addf %396, %398 : vector<8x32xf32>
    %400 = vector.extract_strided_slice %392 {offsets = [0, 64], sizes = [8, 32], strides = [1, 1]} : vector<8x96xf32> to vector<8x32xf32>
    %401 = math.tanh %399 : vector<8x32xf32>
    %402 = arith.mulf %400, %401 : vector<8x32xf32>
    %c6_i32_126 = arith.constant 6 : i32
    %c8_i32_127 = arith.constant 8 : i32
    %403 = arith.muli %c6_i32_126, %c8_i32_127 : i32
    %404 = tpu.assume_multiple %403, 8 : i32
    %405 = arith.index_cast %404 : i32 to index
    %c0_128 = arith.constant 0 : index
    %406 = vector.load %arg8[%405, %c0_128] : memref<64x128xf32, #tpu.memory_space<vmem>>, vector<8x128xf32>
    %407 = arith.truncf %402 : vector<8x32xf32> to vector<8x32xbf16>
    %cst_129 = arith.constant dense<0.000000e+00> : vector<8x128xf32>
    %408 = tpu.matmul %407, %250, %cst_129 {dimension_numbers = #tpu.dot_dimension_numbers<[1], [0], [0], [1], [0, 0, 1, 1], [], []>} : vector<8x32xbf16>, vector<32x128xbf16>, vector<8x128xf32> -> vector<8x128xf32>
    %409 = arith.addf %406, %408 : vector<8x128xf32>
    %410 = vector.extract_strided_slice %409 {offsets = [0, 0], sizes = [8, 96], strides = [1, 1]} : vector<8x128xf32> to vector<8x96xf32>
    %cst_130 = arith.constant 5.000000e-01 : f32
    %411 = vector.broadcast %cst_130 : f32 to vector<8x96xf32>
    %412 = arith.mulf %411, %410 : vector<8x96xf32>
    %413 = math.tanh %412 : vector<8x96xf32>
    %cst_131 = arith.constant 5.000000e-01 : f32
    %414 = vector.broadcast %cst_131 : f32 to vector<8x96xf32>
    %415 = arith.mulf %414, %413 : vector<8x96xf32>
    %cst_132 = arith.constant 5.000000e-01 : f32
    %416 = vector.broadcast %cst_132 : f32 to vector<8x96xf32>
    %417 = arith.addf %415, %416 : vector<8x96xf32>
    %418 = vector.extract_strided_slice %409 {offsets = [0, 96], sizes = [8, 32], strides = [1, 1]} : vector<8x128xf32> to vector<8x32xf32>
    %419 = math.tanh %418 : vector<8x32xf32>
    %420 = vector.extract_strided_slice %417 {offsets = [0, 32], sizes = [8, 32], strides = [1, 1]} : vector<8x96xf32> to vector<8x32xf32>
    %421 = arith.mulf %420, %399 : vector<8x32xf32>
    %422 = vector.extract_strided_slice %417 {offsets = [0, 0], sizes = [8, 32], strides = [1, 1]} : vector<8x96xf32> to vector<8x32xf32>
    %423 = arith.mulf %422, %419 : vector<8x32xf32>
    %424 = arith.addf %421, %423 : vector<8x32xf32>
    %425 = vector.extract_strided_slice %417 {offsets = [0, 64], sizes = [8, 32], strides = [1, 1]} : vector<8x96xf32> to vector<8x32xf32>
    %426 = math.tanh %424 : vector<8x32xf32>
    %427 = arith.mulf %425, %426 : vector<8x32xf32>
    %c7_i32_133 = arith.constant 7 : i32
    %c8_i32_134 = arith.constant 8 : i32
    %428 = arith.muli %c7_i32_133, %c8_i32_134 : i32
    %429 = tpu.assume_multiple %428, 8 : i32
    %430 = arith.index_cast %429 : i32 to index
    %c0_135 = arith.constant 0 : index
    %431 = vector.load %arg8[%430, %c0_135] : memref<64x128xf32, #tpu.memory_space<vmem>>, vector<8x128xf32>
    %432 = arith.truncf %427 : vector<8x32xf32> to vector<8x32xbf16>
    %cst_136 = arith.constant dense<0.000000e+00> : vector<8x128xf32>
    %433 = tpu.matmul %432, %250, %cst_136 {dimension_numbers = #tpu.dot_dimension_numbers<[1], [0], [0], [1], [0, 0, 1, 1], [], []>} : vector<8x32xbf16>, vector<32x128xbf16>, vector<8x128xf32> -> vector<8x128xf32>
    %434 = arith.addf %431, %433 : vector<8x128xf32>
    %435 = vector.extract_strided_slice %434 {offsets = [0, 0], sizes = [8, 96], strides = [1, 1]} : vector<8x128xf32> to vector<8x96xf32>
    %cst_137 = arith.constant 5.000000e-01 : f32
    %436 = vector.broadcast %cst_137 : f32 to vector<8x96xf32>
    %437 = arith.mulf %436, %435 : vector<8x96xf32>
    %438 = math.tanh %437 : vector<8x96xf32>
    %cst_138 = arith.constant 5.000000e-01 : f32
    %439 = vector.broadcast %cst_138 : f32 to vector<8x96xf32>
    %440 = arith.mulf %439, %438 : vector<8x96xf32>
    %cst_139 = arith.constant 5.000000e-01 : f32
    %441 = vector.broadcast %cst_139 : f32 to vector<8x96xf32>
    %442 = arith.addf %440, %441 : vector<8x96xf32>
    %443 = vector.extract_strided_slice %434 {offsets = [0, 96], sizes = [8, 32], strides = [1, 1]} : vector<8x128xf32> to vector<8x32xf32>
    %444 = math.tanh %443 : vector<8x32xf32>
    %445 = vector.extract_strided_slice %442 {offsets = [0, 32], sizes = [8, 32], strides = [1, 1]} : vector<8x96xf32> to vector<8x32xf32>
    %446 = arith.mulf %445, %424 : vector<8x32xf32>
    %447 = vector.extract_strided_slice %442 {offsets = [0, 0], sizes = [8, 32], strides = [1, 1]} : vector<8x96xf32> to vector<8x32xf32>
    %448 = arith.mulf %447, %444 : vector<8x32xf32>
    %449 = arith.addf %446, %448 : vector<8x32xf32>
    %450 = vector.extract_strided_slice %442 {offsets = [0, 64], sizes = [8, 32], strides = [1, 1]} : vector<8x96xf32> to vector<8x32xf32>
    %451 = math.tanh %449 : vector<8x32xf32>
    %452 = arith.mulf %450, %451 : vector<8x32xf32>
    %c8_i32_140 = arith.constant 8 : i32
    %453 = math.tanh %452 : vector<8x32xf32>
    %454 = math.tanh %449 : vector<8x32xf32>
    %455 = tpu.concatenate %238, %239, %453, %454 in 1 : vector<8x32xf32>, vector<8x32xf32>, vector<8x32xf32>, vector<8x32xf32> -> vector<8x128xf32>
    %456 = arith.truncf %455 : vector<8x128xf32> to vector<8x128xbf16>
    %c0_141 = arith.constant 0 : index
    %c0_142 = arith.constant 0 : index
    %457 = vector.load %arg5[%c0_141, %c0_142] : memref<128x128xbf16, #tpu.memory_space<vmem>>, vector<128x128xbf16>
    %cst_143 = arith.constant dense<0.000000e+00> : vector<8x128xf32>
    %458 = tpu.matmul %456, %457, %cst_143 {dimension_numbers = #tpu.dot_dimension_numbers<[1], [0], [0], [1], [0, 0, 1, 1], [], []>} : vector<8x128xbf16>, vector<128x128xbf16>, vector<8x128xf32> -> vector<8x128xf32>
    %c0_144 = arith.constant 0 : index
    %c0_145 = arith.constant 0 : index
    %459 = vector.load %arg6[%c0_144, %c0_145] : memref<1x128xf32, #tpu.memory_space<vmem>>, vector<1x128xf32>
    %460 = vector.broadcast %459 : vector<1x128xf32> to vector<8x128xf32>
    %461 = arith.addf %458, %460 : vector<8x128xf32>
    %c0_146 = arith.constant 0 : index
    %c0_147 = arith.constant 0 : index
    %462 = vector.load %arg7[%c0_146, %c0_147] : memref<8x128xf32, #tpu.memory_space<vmem>>, vector<8x128xf32>
    tpu.vector_store %arg7[%c0_146, %c0_147], %461 {strides = array<i32>} : memref<8x128xf32, #tpu.memory_space<vmem>>, vector<8x128xf32>,
    return
  }
}

</mosaic_0001>

<bundles_post_ra>
// kernel: qst_encoder_forward.1
= control target key start
LH: loop header
LB: loop body
LE: loop exit
PB: predicated region body
PF: predicated region fallthrough
CT: control target
= control target key end

     0   :  { %vm67_vm0 = vcmask 261120   ;;  %v1359_v8 = vmov 0   ;;  %s1360_s14 = smov 32   ;;  %s1361_s15 = smov 64   ;;  %vm178_vm1 = vcmask 257024   ;;  %vm1014_vm2 = vcmask 523264   ;;  %s1691_s1 = inlined_call_operand.vmem [shape: bf16[32,128], index: 1, kind: input, shape index: {}]   ;;  %s1692_s3 = inlined_call_operand.vmem [shape: bf16[2,32,128], index: 3, kind: input, shape index: {}]   ;;  %s1693_s0 = inlined_call_operand.vmem [shape: f32[64,32], index: 0, kind: input, shape index: {}]   ;;  %s1694_s4 = inlined_call_operand.vmem [shape: f32[2,1,128], index: 4, kind: input, shape index: {}]   ;;  %s1695_s2 = inlined_call_operand.vmem [shape: bf16[1,32,128], index: 2, kind: input, shape index: {}]   ;;  %s1696_s5 = inlined_call_operand.vmem [shape: bf16[128,128], index: 5, kind: input, shape index: {}]   ;;  %s1697_s6 = inlined_call_operand.vmem [shape: f32[1,128], index: 6, kind: input, shape index: {}]   ;;  %s1698_s7 = inlined_call_operand.vmem [shape: f32[8,128], index: 7, kind: output, shape index: {}]  }
   0x1   :  { %v1213_v0 = vld [vmem:[%s1691_s1 + $0x8] sm:$0xff]  ;;  %v1212_v2 = vld [vmem:[%s1691_s1] sm:$0xff]  ;;  %v29_v49 = vld [vmem:[%s1693_s0 + $0x10] sm:$0xff]  ;;  %vm1016_vm3 = vcmask 785408  }
   0x2   :  { %v1408_v1 = vld [vmem:[%s1692_s3 + $0x8] sm:$0xff]  ;;  %v27_v3 = vld [vmem:[%s1693_s0] sm:$0xff]  ;;  %86 = vmatpush.bf16.msra.mxu0 %v1213_v0  ;;  %v30_v50 = vld [vmem:[%s1693_s0 + $0x18] sm:$0xff] }
   0x3   :  { %v28_v4 = vld [vmem:[%s1693_s0 + $0x8] sm:$0xff]  ;;  %143 = vmatpush.bf16.msra.mxu1 %v1408_v1  ;;  %v1214_v5 = vld [vmem:[%s1692_s3] sm:$0xff]  ;;  %1243 = vtanh.f32 %v27_v3  ;;  %195 = vmatpush.bf16.msra.mxu2 %v1408_v1 }
   0x4   :  { %1245 = vtanh.f32 %v28_v4  ;;  %247 = vmatpush.bf16.msra.mxu3 %v1408_v1  ;;  %v1434_v10 = vld [vmem:[%s1694_s4] ss:$0 sm:$0xff] }
   0x6   :  { %87 = vmatpush.bf16.msra.mxu0 %v1212_v2 }
   0x7   :  { %144 = vmatpush.bf16.msra.mxu1 %v1214_v5  ;;  %196 = vmatpush.bf16.msra.mxu2 %v1214_v5 }
   0x8   :  { %248 = vmatpush.bf16.msra.mxu3 %v1214_v5 }
   0x9   :  { %v1244_v6 = vpop.eup %1243 }
   0xa   :  { %v1246_v7 = vpop.eup %1245  ;;  %145 = vmatmul.bf16.vlgmr.msra.gmra.mxu1 %v1359_v8 }
   0xb   :  { %299 = vmatpush.bf16.msrb.mxu1 %v1408_v1  ;;  %351 = vmatpush.bf16.msrb.mxu2 %v1408_v1  ;;  %v43_v9 = vpack.c.bf16 %v1246_v7, %v1244_v6 }
   0xc   :  { %403 = vmatpush.bf16.msrb.mxu3 %v1408_v1 }
   0xd   :  { %1113 = vmatmul.msk.bf16.vlgmr.msra.gmra.mxu0 %vm67_vm0, %v43_v9 }
   0xf   :  { %300 = vmatpush.bf16.msrb.mxu1 %v1214_v5  ;;  %352 = vmatpush.bf16.msrb.mxu2 %v1214_v5 }
  0x10   :  { %404 = vmatpush.bf16.msrb.mxu3 %v1214_v5 }
  0x13   :  { %455 = vmatpush.bf16.msra.mxu1 %v1408_v1 }
  0x17   :  { %456 = vmatpush.bf16.msra.mxu1 %v1214_v5 }
  0x87   :  { %v146_v11 = vpop.f32.mrf.mxu1 }
  0x8a   :  { %v89_v12 = vpop.f32.mrf.mxu0 }
  0x8b   :  { %v90_v13 = vadd.f32 %v1434_v10, %v89_v12 }
  0x8d   :  { %v150_v14 = vadd.f32 %v146_v11, %v90_v13 }
  0x8f   :  { %1247 = vtanh.f32 %v150_v14  ;;  %v148_v15 = vpop.f32.mrf.mxu1  ;;  %v151_v17 = vmul.f32 0.5, %v150_v14 }
  0x91   :  { %1249 = vtanh.f32 %v151_v17 }
  0x92   :  { %v91_v33 = vpop.f32.mrf.mxu0 }
  0x93   :  { %v92_v34 = vadd.f32 %v1434_v10, %v91_v33 }
  0x95   :  { %v1248_v16 = vpop.eup %1247 }
  0x96   :  { %158 = vrot.lane.b32.xlu0 %v1248_v16, %s1360_s14 }
  0x97   :  { %v1250_v18 = vpop.eup %1249 }
  0x98   :  { %v153_v19 = vmul.f32 0.5, %v1250_v18 }
  0x9a   :  { %v154_v20 = vadd.f32 0.5, %v153_v19 }
  0x9c   :  { %v156_v23 = vmul.f32 0.0, %v154_v20 }
 0x108   :  { %v159_v21 = vpop.permute.xlu0 %158 }
 0x109   :  { %v161_v22 = vmul.f32 %v159_v21, %v154_v20 }
 0x10b   :  { %163 = vrot.lane.b32.xlu0 %v161_v22, %s1360_s14 }
 0x17d   :  { %v164_v24 = vpop.permute.xlu0 %163 }
 0x17e   :  { %v166_v25 = vadd.f32 %v164_v24, %v156_v23 }
 0x180   :  { %1251 = vtanh.f32 %v166_v25 }
 0x186   :  { %v1252_v26 = vpop.eup %1251 }
 0x187   :  { %169 = vrot.lane.b32.xlu1 %v1252_v26, %s1360_s14 }
 0x1f9   :  { %v170_v27 = vpop.permute.xlu1 %169 }
 0x1fa   :  { %v172_v28 = vmul.f32 %v170_v27, %v154_v20 }
 0x1fc   :  { %v1440_v29 = vpack.c.bf16 %v172_v28, %v172_v28 }
 0x1fe   :  { %v182_v30 = vunpack.c.l.b16 %v1440_v29 }
 0x200   :  { %v183_v31 = vpack.c.b16 %v182_v30, %v182_v30 }
 0x202   :  { %184 = vrot.lane.b32.xlu1 %v183_v31, %s1361_s15 }
 0x274   :  { %v185_v32 = vpop.permute.xlu1 %184 }
 0x275   :  { %1125 = vmatmul.msk.bf16.vlgmr.msra.gmra.mxu2 %vm67_vm0, %v185_v32 }
 0x276   :  { %507 = vmatpush.bf16.msra.mxu2 %v1408_v1 }
 0x27a   :  { %508 = vmatpush.bf16.msra.mxu2 %v1214_v5 }
 0x2f8   :  { %v198_v35 = vpop.f32.mrf.mxu2 }
 0x2f9   :  { %v202_v36 = vadd.f32 %v198_v35, %v92_v34 }
 0x2fb   :  { %1253 = vtanh.f32 %v202_v36  ;;  %v203_v39 = vmul.f32 0.5, %v202_v36 }
 0x2fd   :  { %1255 = vtanh.f32 %v203_v39 }
 0x300   :  { %v200_v37 = vpop.f32.mrf.mxu2 }
 0x301   :  { %v1254_v38 = vpop.eup %1253  ;;  %v31_v37 = vld [vmem:[%s1693_s0 + $0x20] sm:$0xff] }
 0x302   :  { %210 = vrot.lane.b32.xlu2 %v1254_v38, %s1360_s14  ;;  %v32_v38 = vld [vmem:[%s1693_s0 + $0x28] sm:$0xff] }
 0x303   :  { %v1256_v40 = vpop.eup %1255 }
 0x304   :  { %v205_v41 = vmul.f32 0.5, %v1256_v40 }
 0x306   :  { %v206_v42 = vadd.f32 0.5, %v205_v41 }
 0x308   :  { %v208_v45 = vmul.f32 %v206_v42, %v166_v25 }
 0x35c   :  { %v211_v43 = vpop.permute.xlu2 %210 }
 0x35d   :  { %v213_v44 = vmul.f32 %v211_v43, %v206_v42 }
 0x35f   :  { %215 = vrot.lane.b32.xlu2 %v213_v44, %s1360_s14 }
 0x3b9   :  { %v216_v46 = vpop.permute.xlu2 %215 }
 0x3ba   :  { %v218_v47 = vadd.f32 %v216_v46, %v208_v45 }
 0x3bc   :  { %1257 = vtanh.f32 %v218_v47 }
 0x3bd   :  { %1259 = vtanh.f32 %v29_v49 }
 0x3be   :  { %1261 = vtanh.f32 %v30_v50 }
 0x3c2   :  { %v1258_v48 = vpop.eup %1257 }
 0x3c3   :  { %221 = vrot.lane.b32.xlu0 %v1258_v48, %s1360_s14  ;;  %v1260_v51 = vpop.eup %1259 }
 0x3c4   :  { %v1262_v52 = vpop.eup %1261 }
 0x3c5   :  { %v44_v53 = vpack.c.bf16 %v1262_v52, %v1260_v51 }
 0x3c7   :  { %1114 = vmatmul.msk.bf16.gmra.mxu0 %vm67_vm0, %v44_v53 }
 0x435   :  { %v222_v54 = vpop.permute.xlu0 %221 }
 0x436   :  { %v224_v55 = vmul.f32 %v222_v54, %v206_v42 }
 0x438   :  { %v1457_v56 = vpack.c.bf16 %v224_v55, %v224_v55 }
 0x43a   :  { %v234_v57 = vunpack.c.l.b16 %v1457_v56 }
 0x43c   :  { %v235_v58 = vpack.c.b16 %v234_v57, %v234_v57 }
 0x43e   :  { %236 = vrot.lane.b32.xlu1 %v235_v58, %s1361_s15 }
 0x444   :  { %v94_v60 = vpop.f32.mrf.mxu0 }
 0x445   :  { %v95_v61 = vadd.f32 %v1434_v10, %v94_v60 }
 0x44c   :  { %v96_v20 = vpop.f32.mrf.mxu0 }
 0x44d   :  { %v97_v21 = vadd.f32 %v1434_v10, %v96_v20 }
 0x4b0   :  { %v237_v59 = vpop.permute.xlu1 %236 }
 0x4b1   :  { %1126 = vmatmul.msk.bf16.vlgmr.msra.gmra.mxu3 %vm67_vm0, %v237_v59 }
 0x534   :  { %v250_v62 = vpop.f32.mrf.mxu3 }
 0x535   :  { %v254_v63 = vadd.f32 %v250_v62, %v95_v61 }
 0x537   :  { %1263 = vtanh.f32 %v254_v63  ;;  %v255_v2 = vmul.f32 0.5, %v254_v63 }
 0x539   :  { %1265 = vtanh.f32 %v255_v2 }
 0x53c   :  { %v252_v0 = vpop.f32.mrf.mxu3 }
 0x53d   :  { %v1264_v1 = vpop.eup %1263 }
 0x53e   :  { %262 = vrot.lane.b32.xlu2 %v1264_v1, %s1360_s14 }
 0x53f   :  { %v1266_v3 = vpop.eup %1265 }
 0x540   :  { %v257_v4 = vmul.f32 0.5, %v1266_v3 }
 0x542   :  { %v258_v5 = vadd.f32 0.5, %v257_v4 }
 0x544   :  { %v260_v9 = vmul.f32 %v258_v5, %v218_v47 }
 0x598   :  { %v263_v6 = vpop.permute.xlu2 %262 }
 0x599   :  { %v265_v7 = vmul.f32 %v263_v6, %v258_v5 }
 0x59b   :  { %267 = vrot.lane.b32.xlu0 %v265_v7, %s1360_s14 }
 0x60d   :  { %v268_v11 = vpop.permute.xlu0 %267 }
 0x60e   :  { %v270_v12 = vadd.f32 %v268_v11, %v260_v9 }
 0x610   :  { %1267 = vtanh.f32 %v270_v12 }
 0x616   :  { %v1268_v13 = vpop.eup %1267 }
 0x617   :  { %273 = vrot.lane.b32.xlu1 %v1268_v13, %s1360_s14 }
 0x689   :  { %v274_v14 = vpop.permute.xlu1 %273 }
 0x68a   :  { %v276_v15 = vmul.f32 %v274_v14, %v258_v5 }
 0x68c   :  { %v1466_v16 = vpack.c.bf16 %v276_v15, %v276_v15 }
 0x68e   :  { %v286_v17 = vunpack.c.l.b16 %v1466_v16 }
 0x690   :  { %v287_v18 = vpack.c.b16 %v286_v17, %v286_v17 }
 0x692   :  { %288 = vrot.lane.b32.xlu2 %v287_v18, %s1361_s15 }
 0x6ec   :  { %v289_v19 = vpop.permute.xlu2 %288 }
 0x6ed   :  { %1127 = vmatmul.msk.bf16.vlgmr.msrb.gmra.mxu1 %vm67_vm0, %v289_v19 }
 0x76a   :  { %v302_v22 = vpop.f32.mrf.mxu1 }
 0x76b   :  { %v306_v23 = vadd.f32 %v302_v22, %v97_v21 }
 0x76d   :  { %1269 = vtanh.f32 %v306_v23  ;;  %v307_v26 = vmul.f32 0.5, %v306_v23 }
 0x76f   :  { %1271 = vtanh.f32 %v307_v26 }
 0x772   :  { %v304_v24 = vpop.f32.mrf.mxu1 }
 0x773   :  { %v1270_v25 = vpop.eup %1269 }
 0x774   :  { %314 = vrot.lane.b32.xlu0 %v1270_v25, %s1360_s14 }
 0x775   :  { %v1272_v27 = vpop.eup %1271 }
 0x776   :  { %v309_v28 = vmul.f32 0.5, %v1272_v27  ;;  %v1220_v27 = vld [vmem:[%s1695_s2] sm:$0xff] }
 0x778   :  { %v310_v30 = vadd.f32 0.5, %v309_v28  ;;  %v33_v28 = vld [vmem:[%s1693_s0 + $0x30] sm:$0xff] }
 0x77a   :  { %v312_v33 = vmul.f32 %v310_v30, %v270_v12 }
 0x7e6   :  { %v315_v31 = vpop.permute.xlu0 %314 }
 0x7e7   :  { %v317_v32 = vmul.f32 %v315_v31, %v310_v30 }
 0x7e9   :  { %319 = vrot.lane.b32.xlu1 %v317_v32, %s1360_s14 }
 0x85b   :  { %v320_v34 = vpop.permute.xlu1 %319 }
 0x85c   :  { %v322_v35 = vadd.f32 %v320_v34, %v312_v33 }
 0x85e   :  { %1273 = vtanh.f32 %v322_v35 }
 0x85f   :  { %1275 = vtanh.f32 %v31_v37 }
 0x860   :  { %1277 = vtanh.f32 %v32_v38 }
 0x864   :  { %v1274_v36 = vpop.eup %1273 }
 0x865   :  { %325 = vrot.lane.b32.xlu2 %v1274_v36, %s1360_s14  ;;  %v1276_v39 = vpop.eup %1275 }
 0x866   :  { %v1278_v40 = vpop.eup %1277 }
 0x867   :  { %v45_v41 = vpack.c.bf16 %v1278_v40, %v1276_v39  ;;  %v1530_v40 = vld [vmem:[%s1692_s3 + $0x18] sm:$0xff] }
 0x868   :  { %667 = vmatpush.bf16.msrb.mxu1 %v1530_v40  ;;  %755 = vmatpush.bf16.msrb.mxu0 %v1530_v40 }
 0x869   :  { %1115 = vmatmul.msk.bf16.gmra.mxu0 %vm67_vm0, %v45_v41  ;;  %v1536_v41 = vld [vmem:[%s1692_s3 + $0x10] sm:$0xff] }
 0x86c   :  { %668 = vmatpush.bf16.msrb.mxu1 %v1536_v41  ;;  %756 = vmatpush.bf16.msrb.mxu0 %v1536_v41 }
 0x870   :  { %887 = vmatpush.bf16.msra.mxu0 %v1530_v40 }
 0x874   :  { %888 = vmatpush.bf16.msra.mxu0 %v1536_v41 }
 0x8bf   :  { %v326_v42 = vpop.permute.xlu2 %325 }
 0x8c0   :  { %v328_v43 = vmul.f32 %v326_v42, %v310_v30  ;;  %v34_v30 = vld [vmem:[%s1693_s0 + $0x38] sm:$0xff] }
 0x8c2   :  { %v1482_v44 = vpack.c.bf16 %v328_v43, %v328_v43 }
 0x8c4   :  { %v338_v45 = vunpack.c.l.b16 %v1482_v44 }
 0x8c6   :  { %v339_v46 = vpack.c.b16 %v338_v45, %v338_v45 }
 0x8c8   :  { %340 = vrot.lane.b32.xlu0 %v339_v46, %s1361_s15 }
 0x8e6   :  { %v99_v48 = vpop.f32.mrf.mxu0 }
 0x8e7   :  { %v100_v49 = vadd.f32 %v1434_v10, %v99_v48 }
 0x8ee   :  { %v101_v7 = vpop.f32.mrf.mxu0 }
 0x8ef   :  { %v102_v9 = vadd.f32 %v1434_v10, %v101_v7 }
 0x93a   :  { %v341_v47 = vpop.permute.xlu0 %340 }
 0x93b   :  { %1128 = vmatmul.msk.bf16.vlgmr.msrb.gmra.mxu2 %vm67_vm0, %v341_v47 }
 0x93c   :  { %711 = vmatpush.bf16.msrb.mxu2 %v1530_v40 }
 0x940   :  { %712 = vmatpush.bf16.msrb.mxu2 %v1536_v41 }
 0x9be   :  { %v354_v50 = vpop.f32.mrf.mxu2 }
 0x9bf   :  { %v358_v51 = vadd.f32 %v354_v50, %v100_v49  ;;  %v1556_v50 = vld [vmem:[%s1694_s4 + $0x1] ss:$0 sm:$0xff] }
 0x9c1   :  { %1279 = vtanh.f32 %v358_v51  ;;  %v359_v54 = vmul.f32 0.5, %v358_v51 }
 0x9c3   :  { %1281 = vtanh.f32 %v359_v54 }
 0x9c6   :  { %v356_v52 = vpop.f32.mrf.mxu2 }
 0x9c7   :  { %v1280_v53 = vpop.eup %1279 }
 0x9c8   :  { %366 = vrot.lane.b32.xlu1 %v1280_v53, %s1360_s14 }
 0x9c9   :  { %v1282_v55 = vpop.eup %1281 }
 0x9ca   :  { %v361_v57 = vmul.f32 0.5, %v1282_v55 }
 0x9cc   :  { %v362_v58 = vadd.f32 0.5, %v361_v57 }
 0x9ce   :  { %v364_v61 = vmul.f32 %v362_v58, %v322_v35 }
 0xa3a   :  { %v367_v59 = vpop.permute.xlu1 %366 }
 0xa3b   :  { %v369_v60 = vmul.f32 %v367_v59, %v362_v58 }
 0xa3d   :  { %371 = vrot.lane.b32.xlu2 %v369_v60, %s1360_s14 }
 0xa97   :  { %v372_v62 = vpop.permute.xlu2 %371 }
 0xa98   :  { %v374_v63 = vadd.f32 %v372_v62, %v364_v61 }
 0xa9a   :  { %1283 = vtanh.f32 %v374_v63 }
 0xaa0   :  { %v1284_v0 = vpop.eup %1283 }
 0xaa1   :  { %377 = vrot.lane.b32.xlu0 %v1284_v0, %s1360_s14 }
 0xb13   :  { %v378_v1 = vpop.permute.xlu0 %377 }
 0xb14   :  { %v380_v2 = vmul.f32 %v378_v1, %v362_v58 }
 0xb16   :  { %v1491_v3 = vpack.c.bf16 %v380_v2, %v380_v2 }
 0xb18   :  { %v390_v4 = vunpack.c.l.b16 %v1491_v3 }
 0xb1a   :  { %v391_v5 = vpack.c.b16 %v390_v4, %v390_v4 }
 0xb1c   :  { %392 = vrot.lane.b32.xlu1 %v391_v5, %s1361_s15 }
 0xb8e   :  { %v393_v6 = vpop.permute.xlu1 %392 }
 0xb8f   :  { %1129 = vmatmul.msk.bf16.vlgmr.msrb.gmra.mxu3 %vm67_vm0, %v393_v6 }
 0xc12   :  { %v406_v11 = vpop.f32.mrf.mxu3 }
 0xc13   :  { %v410_v12 = vadd.f32 %v406_v11, %v102_v9 }
 0xc15   :  { %1285 = vtanh.f32 %v410_v12  ;;  %v411_v15 = vmul.f32 0.5, %v410_v12 }
 0xc17   :  { %1287 = vtanh.f32 %v411_v15 }
 0xc1a   :  { %v408_v13 = vpop.f32.mrf.mxu3 }
 0xc1b   :  { %v1286_v14 = vpop.eup %1285 }
 0xc1c   :  { %418 = vrot.lane.b32.xlu2 %v1286_v14, %s1360_s14 }
 0xc1d   :  { %v1288_v17 = vpop.eup %1287 }
 0xc1e   :  { %v413_v18 = vmul.f32 0.5, %v1288_v17 }
 0xc20   :  { %v414_v19 = vadd.f32 0.5, %v413_v18 }
 0xc22   :  { %v416_v22 = vmul.f32 %v414_v19, %v374_v63 }
 0xc76   :  { %v419_v20 = vpop.permute.xlu2 %418 }
 0xc77   :  { %v421_v21 = vmul.f32 %v419_v20, %v414_v19 }
 0xc79   :  { %423 = vrot.lane.b32.xlu0 %v421_v21, %s1360_s14 }
 0xc81   :  { %175 = vrot.lane.b32.xlu0 %v1440_v29, %s1361_s15  ;;  %v1221_v29 = vld [vmem:[%s1695_s2 + $0x8] sm:$0xff] }
 0xc82   :  { %612 = vmatpush.bf16.msra.mxu3 %v1221_v29 }
 0xc86   :  { %613 = vmatpush.bf16.msra.mxu3 %v1220_v27 }
 0xceb   :  { %v424_v23 = vpop.permute.xlu0 %423 }
 0xcec   :  { %v1501_v24 = vadd.f32 %v424_v23, %v416_v22 }
 0xcee   :  { %1289 = vtanh.f32 %v1501_v24 }
 0xcef   :  { %1291 = vtanh.f32 %v33_v28 }
 0xcf0   :  { %1293 = vtanh.f32 %v34_v30 }
 0xcf3   :  { %v176_v25 = vpop.permute.xlu0 %175 }
 0xcf4   :  { %v1290_v26 = vpop.eup %1289  ;;  %179 = vst.msk [vmem:[#allocation3] sm:$0xf] %vm178_vm1, %v176_v25 }
 0xcf5   :  { %429 = vrot.lane.b32.xlu1 %v1290_v26, %s1360_s14 }
 0xcfd   :  { %227 = vrot.lane.b32.xlu1 %v1457_v56, %s1361_s15  ;;  %v1292_v56 = vpop.eup %1291 }
 0xcfe   :  { %v1294_v31 = vpop.eup %1293 }
 0xcff   :  { %v46_v32 = vpack.c.bf16 %v1294_v31, %v1292_v56 }
 0xd01   :  { %1116 = vmatmul.msk.bf16.gmra.mxu0 %vm67_vm0, %v46_v32 }
 0xd67   :  { %v430_v33 = vpop.permute.xlu1 %429 }
 0xd68   :  { %v432_v34 = vmul.f32 %v430_v33, %v414_v19 }
 0xd6a   :  { %v1521_v35 = vpack.c.bf16 %v432_v34, %v432_v34 }
 0xd6c   :  { %v442_v36 = vunpack.c.l.b16 %v1521_v35 }
 0xd6e   :  { %v443_v37 = vpack.c.b16 %v442_v36, %v442_v36 }
 0xd6f   :  { %v228_v38 = vpop.permute.xlu1 %227 }
 0xd70   :  { %231 = vst.msk [vmem:[#allocation3 + $0x4] sm:$0xf] %vm178_vm1, %v228_v38  ;;  %444 = vrot.lane.b32.xlu2 %v443_v37, %s1361_s15 }
 0xd77   :  { %v1216_v39 = vld [vmem:[#allocation3] sm:$0xff] }
 0xd78   :  { %1157 = vmatmul.msk.bf16.vlgmr.msra.gmra.mxu3 %vm67_vm0, %v1216_v39 }
 0xd7e   :  { %v104_v43 = vpop.f32.mrf.mxu0 }
 0xd7f   :  { %v105_v45 = vadd.f32 %v1434_v10, %v104_v43 }
 0xdca   :  { %v445_v42 = vpop.permute.xlu2 %444 }
 0xdcb   :  { %1130 = vmatmul.msk.bf16.vlgmr.msra.gmra.mxu1 %vm67_vm0, %v445_v42 }
 0xdcc   :  { %799 = vmatpush.bf16.msra.mxu1 %v1530_v40 }
 0xdd0   :  { %800 = vmatpush.bf16.msra.mxu1 %v1536_v41 }
 0xddb   :  { %669 = vmatmul.bf16.vlgmr.msrb.gmra.mxu1 %v1359_v8 }
 0xddc   :  { %931 = vmatpush.bf16.msrb.mxu1 %v1530_v40 }
 0xde0   :  { %932 = vmatpush.bf16.msrb.mxu1 %v1536_v41 }
 0xdfb   :  { %v615_v8 = vpop.f32.mrf.mxu3 }
 0xdfc   :  { %v616_v51 = vadd.f32 %v1556_v50, %v615_v8 }
 0xe03   :  { %v617_v28 = vpop.f32.mrf.mxu3 }
 0xe04   :  { %v618_v30 = vadd.f32 %v1556_v50, %v617_v28 }
 0xe48   :  { %v458_v46 = vpop.f32.mrf.mxu1 }
 0xe49   :  { %v462_v47 = vadd.f32 %v458_v46, %v105_v45 }
 0xe4b   :  { %1295 = vtanh.f32 %v462_v47  ;;  %v463_v57 = vmul.f32 0.5, %v462_v47 }
 0xe50   :  { %v460_v48 = vpop.f32.mrf.mxu1 }
 0xe51   :  { %v1296_v49 = vpop.eup %1295 }
 0xe52   :  { %470 = vrot.lane.b32.xlu2 %v1296_v49, %s1360_s14 }
 0xe58   :  { %v670_v52 = vpop.f32.mrf.mxu1 }
 0xe59   :  { %v674_v53 = vadd.f32 %v670_v52, %v616_v51 }
 0xe5b   :  { %1297 = vtanh.f32 %v674_v53  ;;  %v675_v63 = vmul.f32 0.5, %v674_v53 }
 0xe5c   :  { %1299 = vtanh.f32 %v463_v57 }
 0xe5d   :  { %1301 = vtanh.f32 %v675_v63 }
 0xe60   :  { %v672_v54 = vpop.f32.mrf.mxu1 }
 0xe61   :  { %v1298_v55 = vpop.eup %1297 }
 0xe62   :  { %682 = vrot.lane.b32.xlu0 %v1298_v55, %s1360_s14  ;;  %v1300_v58 = vpop.eup %1299 }
 0xe63   :  { %v465_v59 = vmul.f32 0.5, %v1300_v58  ;;  %v1302_v0 = vpop.eup %1301 }
 0xe64   :  { %v677_v1 = vmul.f32 0.5, %v1302_v0 }
 0xe65   :  { %v466_v60 = vadd.f32 0.5, %v465_v59 }
 0xe66   :  { %v678_v2 = vadd.f32 0.5, %v677_v1 }
 0xe67   :  { %v468_v6 = vmul.f32 %v466_v60, %v1501_v24 }
 0xe68   :  { %v680_v12 = vmul.f32 0.0, %v678_v2 }
 0xeac   :  { %v471_v61 = vpop.permute.xlu2 %470 }
 0xead   :  { %v473_v62 = vmul.f32 %v471_v61, %v466_v60 }
 0xeaf   :  { %475 = vrot.lane.b32.xlu1 %v473_v62, %s1360_s14 }
 0xed4   :  { %v683_v4 = vpop.permute.xlu0 %682 }
 0xed5   :  { %v685_v5 = vmul.f32 %v683_v4, %v678_v2 }
 0xed7   :  { %687 = vrot.lane.b32.xlu2 %v685_v5, %s1360_s14 }
 0xf21   :  { %v476_v7 = vpop.permute.xlu1 %475 }
 0xf22   :  { %v1563_v9 = vadd.f32 %v476_v7, %v468_v6 }
 0xf24   :  { %1303 = vtanh.f32 %v1563_v9 }
 0xf2a   :  { %v1304_v11 = vpop.eup %1303 }
 0xf2b   :  { %481 = vrot.lane.b32.xlu0 %v1304_v11, %s1360_s14 }
 0xf31   :  { %v688_v13 = vpop.permute.xlu2 %687 }
 0xf32   :  { %v690_v14 = vadd.f32 %v688_v13, %v680_v12 }
 0xf34   :  { %1305 = vtanh.f32 %v690_v14 }
 0xf3a   :  { %v1306_v15 = vpop.eup %1305 }
 0xf3b   :  { %693 = vrot.lane.b32.xlu1 %v1306_v15, %s1360_s14 }
 0xf9d   :  { %v482_v17 = vpop.permute.xlu0 %481 }
 0xf9e   :  { %v484_v18 = vmul.f32 %v482_v17, %v466_v60 }
 0xfa0   :  { %v1568_v19 = vpack.c.bf16 %v484_v18, %v484_v18 }
 0xfa2   :  { %v494_v20 = vunpack.c.l.b16 %v1568_v19 }
 0xfa4   :  { %v495_v21 = vpack.c.b16 %v494_v20, %v494_v20 }
 0xfa6   :  { %496 = vrot.lane.b32.xlu2 %v495_v21, %s1361_s15 }
 0xfad   :  { %v694_v22 = vpop.permute.xlu1 %693 }
 0xfae   :  { %v696_v23 = vmul.f32 %v694_v22, %v678_v2 }
 0xfb0   :  { %v698_v24 = vpack.c.bf16 %v696_v23, %v696_v23 }
 0xfb2   :  { %700 = vrot.lane.b32.xlu0 %v698_v24, %s1361_s15 }
0x1000   :  { %v497_v25 = vpop.permute.xlu2 %496 }
0x1001   :  { %1131 = vmatmul.msk.bf16.vlgmr.msra.gmra.mxu2 %vm67_vm0, %v497_v25 }
0x1002   :  { %843 = vmatpush.bf16.msra.mxu2 %v1530_v40 }
0x1006   :  { %844 = vmatpush.bf16.msra.mxu2 %v1536_v41 }
0x1024   :  { %v701_v26 = vpop.permute.xlu0 %700 }
0x1025   :  { %1173 = vmatmul.msk.bf16.vlgmr.msrb.gmra.mxu2 %vm67_vm0, %v701_v26 }
0x1026   :  { %975 = vmatpush.bf16.msrb.mxu2 %v1530_v40 }
0x102a   :  { %976 = vmatpush.bf16.msrb.mxu2 %v1536_v41 }
0x1084   :  { %v1579_v29 = vpop.f32.mrf.mxu2 }
0x108c   :  { %v512_v27 = vpop.f32.mrf.mxu2 }
0x10a8   :  { %v714_v56 = vpop.f32.mrf.mxu2 }
0x10a9   :  { %v718_v31 = vadd.f32 %v714_v56, %v618_v30 }
0x10ab   :  { %1307 = vtanh.f32 %v718_v31  ;;  %v719_v34 = vmul.f32 0.5, %v718_v31 }
0x10ad   :  { %1309 = vtanh.f32 %v719_v34 }
0x10b0   :  { %v716_v32 = vpop.f32.mrf.mxu2 }
0x10b1   :  { %v1308_v33 = vpop.eup %1307 }
0x10b2   :  { %726 = vrot.lane.b32.xlu1 %v1308_v33, %s1360_s14 }
0x10b3   :  { %v1310_v36 = vpop.eup %1309 }
0x10b4   :  { %v721_v37 = vmul.f32 0.5, %v1310_v36 }
0x10b6   :  { %v722_v38 = vadd.f32 0.5, %v721_v37 }
0x10b8   :  { %v724_v42 = vmul.f32 %v722_v38, %v690_v14 }
0x10ba   :  { %279 = vrot.lane.b32.xlu1 %v1466_v16, %s1361_s15 }
0x1124   :  { %v727_v39 = vpop.permute.xlu1 %726 }
0x1125   :  { %v729_v40 = vmul.f32 %v727_v39, %v722_v38 }
0x1127   :  { %731 = vrot.lane.b32.xlu2 %v729_v40, %s1360_s14 }
0x112c   :  { %v280_v41 = vpop.permute.xlu1 %279 }
0x112d   :  { %283 = vst.msk [vmem:[#allocation3 + $0x8] sm:$0xf] %vm178_vm1, %v280_v41 }
0x112f   :  { %331 = vrot.lane.b32.xlu2 %v1482_v44, %s1361_s15  ;;  %v1594_v44 = vpop.f32.mrf.mxu0 }
0x1181   :  { %v732_v43 = vpop.permute.xlu2 %731 }
0x1182   :  { %v734_v45 = vadd.f32 %v732_v43, %v724_v42 }
0x1184   :  { %1311 = vtanh.f32 %v734_v45 }
0x1189   :  { %v332_v16 = vpop.permute.xlu2 %331 }
0x118a   :  { %v1312_v46 = vpop.eup %1311  ;;  %335 = vst.msk [vmem:[#allocation3 + $0xc] sm:$0xf] %vm178_vm1, %v332_v16 }
0x118b   :  { %737 = vrot.lane.b32.xlu0 %v1312_v46, %s1360_s14  ;;  %v107_v46 = vadd.f32 %v1434_v10, %v1594_v44 }
0x1191   :  { %v1217_v47 = vld [vmem:[#allocation3 + $0x8] sm:$0xff] }
0x1192   :  { %1158 = vmatmul.msk.bf16.gmra.mxu3 %vm67_vm0, %v1217_v47 }
0x11fd   :  { %v738_v48 = vpop.permute.xlu0 %737 }
0x11fe   :  { %v740_v49 = vmul.f32 %v738_v48, %v722_v38  ;;  %v514_v48 = vadd.f32 %v1579_v29, %v107_v46 }
0x1200   :  { %v742_v8 = vpack.c.bf16 %v740_v49, %v740_v49 }
0x1202   :  { %744 = vrot.lane.b32.xlu0 %v742_v8, %s1361_s15 }
0x1215   :  { %v620_v52 = vpop.f32.mrf.mxu3 }
0x1216   :  { %v621_v53 = vadd.f32 %v1556_v50, %v620_v52 }
0x121d   :  { %v622_v13 = vpop.f32.mrf.mxu3 }
0x121e   :  { %v623_v14 = vadd.f32 %v1556_v50, %v622_v13 }
0x1274   :  { %v745_v51 = vpop.permute.xlu0 %744 }
0x1275   :  { %1174 = vmatmul.msk.bf16.vlgmr.msrb.gmra.mxu0 %vm67_vm0, %v745_v51 }
0x12f2   :  { %v758_v54 = vpop.f32.mrf.mxu0 }
0x12f3   :  { %v762_v55 = vadd.f32 %v758_v54, %v621_v53 }
0x12f5   :  { %1313 = vtanh.f32 %v762_v55  ;;  %v763_v59 = vmul.f32 0.5, %v762_v55 }
0x12f7   :  { %1315 = vtanh.f32 %v763_v59 }
0x12fa   :  { %v760_v57 = vpop.f32.mrf.mxu0 }
0x12fb   :  { %v1314_v58 = vpop.eup %1313  ;;  %v515_v57 = vmul.f32 0.5, %v514_v48 }
0x12fc   :  { %770 = vrot.lane.b32.xlu1 %v1314_v58, %s1360_s14 }
0x12fd   :  { %v1316_v60 = vpop.eup %1315 }
0x12fe   :  { %v765_v61 = vmul.f32 0.5, %v1316_v60 }
0x1300   :  { %v766_v62 = vadd.f32 0.5, %v765_v61 }
0x1302   :  { %v768_v1 = vmul.f32 %v766_v62, %v734_v45 }
0x136e   :  { %v771_v63 = vpop.permute.xlu1 %770 }
0x136f   :  { %v773_v0 = vmul.f32 %v771_v63, %v766_v62 }
0x1371   :  { %775 = vrot.lane.b32.xlu2 %v773_v0, %s1360_s14 }
0x13cb   :  { %v776_v2 = vpop.permute.xlu2 %775 }
0x13cc   :  { %v778_v4 = vadd.f32 %v776_v2, %v768_v1 }
0x13ce   :  { %1317 = vtanh.f32 %v778_v4 }
0x13d4   :  { %v1318_v5 = vpop.eup %1317 }
0x13d5   :  { %781 = vrot.lane.b32.xlu0 %v1318_v5, %s1360_s14 }
0x1447   :  { %v782_v6 = vpop.permute.xlu0 %781 }
0x1448   :  { %v784_v7 = vmul.f32 %v782_v6, %v766_v62 }
0x144a   :  { %v786_v11 = vpack.c.bf16 %v784_v7, %v784_v7 }
0x144c   :  { %788 = vrot.lane.b32.xlu1 %v786_v11, %s1361_s15 }
0x14be   :  { %v789_v12 = vpop.permute.xlu1 %788 }
0x14bf   :  { %1175 = vmatmul.msk.bf16.vlgmr.msra.gmra.mxu1 %vm67_vm0, %v789_v12 }
0x153c   :  { %v802_v15 = vpop.f32.mrf.mxu1 }
0x153d   :  { %v806_v17 = vadd.f32 %v802_v15, %v623_v14 }
0x153f   :  { %1319 = vtanh.f32 %v806_v17  ;;  %v807_v21 = vmul.f32 0.5, %v806_v17 }
0x1541   :  { %1321 = vtanh.f32 %v807_v21 }
0x1544   :  { %v804_v18 = vpop.f32.mrf.mxu1 }
0x1545   :  { %v1320_v20 = vpop.eup %1319 }
0x1546   :  { %814 = vrot.lane.b32.xlu2 %v1320_v20, %s1360_s14 }
0x1547   :  { %v1322_v22 = vpop.eup %1321 }
0x1548   :  { %v809_v23 = vmul.f32 0.5, %v1322_v22 }
0x154a   :  { %v810_v24 = vadd.f32 0.5, %v809_v23 }
0x154c   :  { %v812_v28 = vmul.f32 %v810_v24, %v778_v4 }
0x154e   :  { %383 = vrot.lane.b32.xlu2 %v1491_v3, %s1361_s15 }
0x15a0   :  { %v815_v25 = vpop.permute.xlu2 %814 }
0x15a1   :  { %v817_v26 = vmul.f32 %v815_v25, %v810_v24 }
0x15a3   :  { %819 = vrot.lane.b32.xlu0 %v817_v26, %s1360_s14 }
0x15a8   :  { %v384_v27 = vpop.permute.xlu2 %383 }
0x15a9   :  { %387 = vst.msk [vmem:[#allocation3 + $0x10] sm:$0xf] %vm178_vm1, %v384_v27 }
0x15ab   :  { %435 = vrot.lane.b32.xlu0 %v1521_v35, %s1361_s15 }
0x1615   :  { %v820_v30 = vpop.permute.xlu0 %819 }
0x1616   :  { %v822_v56 = vadd.f32 %v820_v30, %v812_v28 }
0x1618   :  { %1323 = vtanh.f32 %v822_v56 }
0x161d   :  { %v436_v3 = vpop.permute.xlu0 %435 }
0x161e   :  { %v1324_v31 = vpop.eup %1323  ;;  %439 = vst.msk [vmem:[#allocation3 + $0x14] sm:$0xf] %vm178_vm1, %v436_v3 }
0x161f   :  { %825 = vrot.lane.b32.xlu1 %v1324_v31, %s1360_s14 }
0x1625   :  { %v1218_v32 = vld [vmem:[#allocation3 + $0x10] sm:$0xff] }
0x1626   :  { %1159 = vmatmul.msk.bf16.gmra.mxu3 %vm67_vm0, %v1218_v32 }
0x1691   :  { %v826_v33 = vpop.permute.xlu1 %825 }
0x1692   :  { %v828_v34 = vmul.f32 %v826_v33, %v810_v24 }
0x1694   :  { %v830_v36 = vpack.c.bf16 %v828_v34, %v828_v34 }
0x1696   :  { %832 = vrot.lane.b32.xlu1 %v830_v36, %s1361_s15 }
0x16a9   :  { %v625_v35 = vpop.f32.mrf.mxu3 }
0x16aa   :  { %v626_v38 = vadd.f32 %v1556_v50, %v625_v35 }
0x16b1   :  { %v627_v0 = vpop.f32.mrf.mxu3 }
0x16b2   :  { %v628_v1 = vadd.f32 %v1556_v50, %v627_v0  ;;  %v1229_v0 = vld [vmem:[%s1696_s5 + $0x28] sm:$0xff] }
0x1708   :  { %v833_v37 = vpop.permute.xlu1 %832 }
0x1709   :  { %1176 = vmatmul.msk.bf16.vlgmr.msra.gmra.mxu2 %vm67_vm0, %v833_v37 }
0x178c   :  { %v846_v39 = vpop.f32.mrf.mxu2 }
0x178d   :  { %v850_v40 = vadd.f32 %v846_v39, %v626_v38 }
0x178f   :  { %1325 = vtanh.f32 %v850_v40  ;;  %v851_v43 = vmul.f32 0.5, %v850_v40 }
0x1791   :  { %1327 = vtanh.f32 %v851_v43 }
0x1792   :  { %1329 = vtanh.f32 %v514_v48 }
0x1794   :  { %v848_v41 = vpop.f32.mrf.mxu2 }
0x1795   :  { %v1326_v42 = vpop.eup %1325 }
0x1796   :  { %858 = vrot.lane.b32.xlu2 %v1326_v42, %s1360_s14 }
0x1797   :  { %v1328_v45 = vpop.eup %1327 }
0x1798   :  { %v853_v16 = vmul.f32 0.5, %v1328_v45  ;;  %v1330_v51 = vpop.eup %1329 }
0x179a   :  { %v854_v47 = vadd.f32 0.5, %v853_v16 }
0x179c   :  { %v856_v52 = vmul.f32 %v854_v47, %v822_v56 }
0x17f0   :  { %v859_v49 = vpop.permute.xlu2 %858 }
0x17f1   :  { %v861_v8 = vmul.f32 %v859_v49, %v854_v47 }
0x17f3   :  { %863 = vrot.lane.b32.xlu0 %v861_v8, %s1360_s14 }
0x17fb   :  { %522 = vrot.lane.b32.xlu0 %v1330_v51, %s1360_s14 }
0x1865   :  { %v864_v53 = vpop.permute.xlu0 %863 }
0x1866   :  { %v866_v54 = vadd.f32 %v864_v53, %v856_v52 }
0x1868   :  { %1331 = vtanh.f32 %v866_v54 }
0x1869   :  { %1333 = vtanh.f32 %v515_v57 }
0x186d   :  { %v523_v60 = vpop.permute.xlu0 %522 }
0x186e   :  { %v1332_v55 = vpop.eup %1331 }
0x186f   :  { %869 = vrot.lane.b32.xlu1 %v1332_v55, %s1360_s14  ;;  %v1334_v29 = vpop.eup %1333 }
0x1870   :  { %v517_v59 = vmul.f32 0.5, %v1334_v29 }
0x1872   :  { %v518_v61 = vadd.f32 0.5, %v517_v59 }
0x1874   :  { %v525_v62 = vmul.f32 %v523_v60, %v518_v61  ;;  %v520_v6 = vmul.f32 %v518_v61, %v1563_v9 }
0x18e1   :  { %v870_v10 = vpop.permute.xlu1 %869 }
0x18e2   :  { %v872_v44 = vmul.f32 %v870_v10, %v854_v47 }
0x18e4   :  { %v874_v58 = vpack.c.bf16 %v872_v44, %v872_v44 }
0x18e6   :  { %876 = vrot.lane.b32.xlu2 %v874_v58, %s1361_s15 }
0x18ee   :  { %527 = vrot.lane.b32.xlu2 %v525_v62, %s1360_s14 }
0x1940   :  { %v877_v63 = vpop.permute.xlu2 %876 }
0x1941   :  { %1177 = vmatmul.msk.bf16.vlgmr.msra.gmra.mxu0 %vm67_vm0, %v877_v63  ;;  %v1230_v63 = vld [vmem:[%s1696_s5 + $0x30] sm:$0xff] }
0x1948   :  { %v528_v5 = vpop.permute.xlu2 %527 }
0x1949   :  { %v530_v7 = vadd.f32 %v528_v5, %v520_v6 }
0x19be   :  { %v890_v2 = vpop.f32.mrf.mxu0 }
0x19bf   :  { %v894_v4 = vadd.f32 %v890_v2, %v628_v1  ;;  %v1228_v1 = vld [vmem:[%s1696_s5 + $0x20] sm:$0xff]  ;;  %v1227_v2 = vld [vmem:[%s1696_s5 + $0x18] sm:$0xff] }
0x19c1   :  { %1335 = vtanh.f32 %v894_v4  ;;  %v895_v14 = vmul.f32 0.5, %v894_v4  ;;  %v1226_v4 = vld [vmem:[%s1696_s5 + $0x10] sm:$0xff] }
0x19c2   :  { %1337 = vtanh.f32 %v530_v7 }
0x19c3   :  { %1339 = vtanh.f32 %v895_v14 }
0x19c6   :  { %v892_v11 = vpop.f32.mrf.mxu0 }
0x19c7   :  { %v1336_v12 = vpop.eup %1335  ;;  %v1225_v11 = vld [vmem:[%s1696_s5 + $0x8] sm:$0xff] }
0x19c8   :  { %902 = vrot.lane.b32.xlu1 %v1336_v12, %s1360_s14  ;;  %v1629_v13 = vpop.eup %1337 }
0x19c9   :  { %v1340_v15 = vpop.eup %1339 }
0x19ca   :  { %v897_v17 = vmul.f32 0.5, %v1340_v15 }
0x19cc   :  { %v898_v18 = vadd.f32 0.5, %v897_v17  ;;  %v1224_v17 = vld [vmem:[%s1696_s5] sm:$0xff] }
0x19ce   :  { %v900_v24 = vmul.f32 %v898_v18, %v866_v54 }
0x19d0   :  { %533 = vrot.lane.b32.xlu1 %v1629_v13, %s1360_s14 }
0x1a3a   :  { %v903_v20 = vpop.permute.xlu1 %902 }
0x1a3b   :  { %v905_v21 = vmul.f32 %v903_v20, %v898_v18 }
0x1a3d   :  { %907 = vrot.lane.b32.xlu0 %v905_v21, %s1360_s14 }
0x1a42   :  { %v534_v9 = vpop.permute.xlu1 %533 }
0x1a43   :  { %v1634_v22 = vmul.f32 %v534_v9, %v518_v61 }
0x1a45   :  { %v537_v23 = vpack.c.bf16 %v1634_v22, %v1634_v22  ;;  %487 = vrot.lane.b32.xlu0 %v1568_v19, %s1361_s15 }
0x1a47   :  { %539 = vrot.lane.b32.xlu1 %v537_v23, %s1361_s15 }
0x1aaf   :  { %v908_v25 = vpop.permute.xlu0 %907 }
0x1ab0   :  { %v910_v26 = vadd.f32 %v908_v25, %v900_v24 }
0x1ab2   :  { %1341 = vtanh.f32 %v910_v26 }
0x1ab7   :  { %v488_v27 = vpop.permute.xlu0 %487 }
0x1ab8   :  { %v1342_v28 = vpop.eup %1341  ;;  %491 = vst.msk [vmem:[#allocation3 + $0x18] sm:$0xf] %vm178_vm1, %v488_v27 }
0x1ab9   :  { %913 = vrot.lane.b32.xlu2 %v1342_v28, %s1360_s14  ;;  %v540_v30 = vpop.permute.xlu1 %539  ;;  %v1242_v28 = vld [vmem:[%s1697_s6] ss:$0 sm:$0xff] }
0x1aba   :  { %543 = vst.msk [vmem:[#allocation3 + $0x1c] sm:$0xf] %vm178_vm1, %v540_v30 }
0x1ac1   :  { %v1219_v56 = vld [vmem:[#allocation3 + $0x18] sm:$0xff] }
0x1ac2   :  { %1160 = vmatmul.msk.bf16.gmra.mxu3 %vm67_vm0, %v1219_v56 }
0x1b13   :  { %v914_v3 = vpop.permute.xlu2 %913 }
0x1b14   :  { %v916_v19 = vmul.f32 %v914_v3, %v898_v18 }
0x1b16   :  { %v918_v31 = vpack.c.bf16 %v916_v19, %v916_v19 }
0x1b18   :  { %920 = vrot.lane.b32.xlu2 %v918_v31, %s1361_s15 }
0x1b45   :  { %v630_v33 = vpop.f32.mrf.mxu3 }
0x1b46   :  { %v631_v34 = vadd.f32 %v1556_v50, %v630_v33 }
0x1b4d   :  { %v632_v53 = vpop.f32.mrf.mxu3 }
0x1b4e   :  { %v633_v54 = vadd.f32 %v1556_v50, %v632_v53  ;;  %v1231_v50 = vld [vmem:[%s1696_s5 + $0x38] sm:$0xff] }
0x1b4f   :  { %1087 = vmatpush.bf16.msrb.mxu3 %v1231_v50 }
0x1b53   :  { %1088 = vmatpush.bf16.msrb.mxu3 %v1230_v63 }
0x1b57   :  { %1089 = vmatpush.bf16.msrb.mxu3 %v1229_v0 }
0x1b5b   :  { %1090 = vmatpush.bf16.msrb.mxu3 %v1228_v1 }
0x1b5f   :  { %1091 = vmatpush.bf16.msrb.mxu3 %v1227_v2 }
0x1b63   :  { %1092 = vmatpush.bf16.msrb.mxu3 %v1226_v4 }
0x1b67   :  { %1093 = vmatpush.bf16.msrb.mxu3 %v1225_v11 }
0x1b6b   :  { %1094 = vmatpush.bf16.msrb.mxu3 %v1224_v17 }
0x1b72   :  { %v921_v32 = vpop.permute.xlu2 %920 }
0x1b73   :  { %1178 = vmatmul.msk.bf16.vlgmr.msrb.gmra.mxu1 %vm67_vm0, %v921_v32 }
0x1bf0   :  { %v934_v36 = vpop.f32.mrf.mxu1 }
0x1bf1   :  { %v938_v37 = vadd.f32 %v934_v36, %v631_v34 }
0x1bf3   :  { %1343 = vtanh.f32 %v938_v37  ;;  %v939_v39 = vmul.f32 0.5, %v938_v37 }
0x1bf5   :  { %1345 = vtanh.f32 %v939_v39 }
0x1bf8   :  { %v936_v35 = vpop.f32.mrf.mxu1 }
0x1bf9   :  { %v1344_v38 = vpop.eup %1343 }
0x1bfa   :  { %946 = vrot.lane.b32.xlu0 %v1344_v38, %s1360_s14 }
0x1bfb   :  { %v1346_v40 = vpop.eup %1345 }
0x1bfc   :  { %v941_v41 = vmul.f32 0.5, %v1346_v40 }
0x1bfe   :  { %v942_v42 = vadd.f32 0.5, %v941_v41 }
0x1c00   :  { %v944_v16 = vmul.f32 %v942_v42, %v910_v26 }
0x1c6c   :  { %v947_v43 = vpop.permute.xlu0 %946 }
0x1c6d   :  { %v949_v45 = vmul.f32 %v947_v43, %v942_v42 }
0x1c6f   :  { %951 = vrot.lane.b32.xlu1 %v949_v45, %s1360_s14 }
0x1ce1   :  { %v952_v46 = vpop.permute.xlu1 %951 }
0x1ce2   :  { %v954_v47 = vadd.f32 %v952_v46, %v944_v16 }
0x1ce4   :  { %1347 = vtanh.f32 %v954_v47 }
0x1cea   :  { %v1348_v48 = vpop.eup %1347 }
0x1ceb   :  { %957 = vrot.lane.b32.xlu2 %v1348_v48, %s1360_s14 }
0x1d45   :  { %v958_v49 = vpop.permute.xlu2 %957 }
0x1d46   :  { %v960_v8 = vmul.f32 %v958_v49, %v942_v42 }
0x1d48   :  { %v962_v51 = vpack.c.bf16 %v960_v8, %v960_v8 }
0x1d4a   :  { %964 = vrot.lane.b32.xlu0 %v962_v51, %s1361_s15 }
0x1dbc   :  { %v965_v52 = vpop.permute.xlu0 %964 }
0x1dbd   :  { %1179 = vmatmul.msk.bf16.vlgmr.msrb.gmra.mxu2 %vm67_vm0, %v965_v52 }
0x1e40   :  { %v978_v55 = vpop.f32.mrf.mxu2 }
0x1e41   :  { %v982_v57 = vadd.f32 %v978_v55, %v633_v54 }
0x1e43   :  { %1349 = vtanh.f32 %v982_v57  ;;  %v983_v29 = vmul.f32 0.5, %v982_v57 }
0x1e45   :  { %1351 = vtanh.f32 %v983_v29 }
0x1e46   :  { %1353 = vtanh.f32 %v1634_v22 }
0x1e48   :  { %v980_v10 = vpop.f32.mrf.mxu2 }
0x1e49   :  { %v1350_v44 = vpop.eup %1349 }
0x1e4a   :  { %990 = vrot.lane.b32.xlu1 %v1350_v44, %s1360_s14 }
0x1e4b   :  { %v1352_v58 = vpop.eup %1351 }
0x1e4c   :  { %v985_v59 = vmul.f32 0.5, %v1352_v58  ;;  %v1354_v12 = vpop.eup %1353 }
0x1e4e   :  { %v986_v60 = vadd.f32 0.5, %v985_v59 }
0x1e50   :  { %v988_v5 = vmul.f32 %v986_v60, %v954_v47 }
0x1ebc   :  { %v991_v61 = vpop.permute.xlu1 %990 }
0x1ebd   :  { %v993_v62 = vmul.f32 %v991_v61, %v986_v60 }
0x1ebf   :  { %995 = vrot.lane.b32.xlu2 %v993_v62, %s1360_s14 }
0x1f19   :  { %v996_v6 = vpop.permute.xlu2 %995 }
0x1f1a   :  { %v998_v7 = vadd.f32 %v996_v6, %v988_v5 }
0x1f1c   :  { %1355 = vtanh.f32 %v998_v7 }
0x1f22   :  { %v1356_v14 = vpop.eup %1355 }
0x1f23   :  { %1001 = vrot.lane.b32.xlu0 %v1356_v14, %s1360_s14  ;;  %v1235_v15 = vpack.i.bf16 %v1356_v14, %v1354_v12 }
0x1f25   :  { %1236 = vrot.lane.b32.xlu1 %v1235_v15, %s1361_s15 }
0x1f95   :  { %v1002_v18 = vpop.permute.xlu0 %1001 }
0x1f96   :  { %v1004_v20 = vmul.f32 %v1002_v18, %v986_v60 }
0x1f97   :  { %v1237_v21 = vpop.permute.xlu1 %1236 }
0x1f98   :  { %1357 = vtanh.f32 %v1004_v20  ;;  %v1238_v9 = vunpack.i.l.bf16 %v1237_v21  ;;  %v1239_v23 = vunpack.i.h.bf16 %v1237_v21 }
0x1f9a   :  { %v1013_v24 = vsel %vm67_vm0, %v1238_v9, %v1629_v13 }
0x1f9e   :  { %v1358_v22 = vpop.eup %1357 }
0x1f9f   :  { %v1015_v25 = vsel %vm1014_vm2, %v1013_v24, %v1358_v22 }
0x1fa0   :  { %v1017_v26 = vsel %vm1016_vm3, %v1015_v25, %v1239_v23 }
0x1fa1   :  { %v1018_v27 = vpack.c.bf16 %v1017_v26, %v1017_v26 }
0x1fa3   :  { %1095 = vmatmul.bf16.vlgmr.msrb.gmra.mxu3 %v1018_v27 }
0x2026   :  { %v1096_v30 = vpop.f32.mrf.mxu3 }
0x2027   :  { %v1097_v56 = vadd.f32 %v1242_v28, %v1096_v30 }
0x2029   :  { %1100 = vst [vmem:[%s1698_s7] sm:$0xff] %v1097_v56 }
0x202e   :  { %v1098_v3 = vpop.f32.mrf.mxu3 }

</bundles_post_ra>
